<compile_context>
chip_gen: v5e
topology: v5e:2x2
jax: 0.10.0
libtpu: 0.0.40
codegen_flags: <defaults>
</compile_context>

<pallas_src>
import functools

import jax
import jax.numpy as jnp
from jax import lax
from jax.experimental import pallas as pl
from jax.experimental.pallas import tpu as pltpu


def _shifted_variants(x3d, d):
    """Three kw column-shift variants of a (rows, W, Cin) block, flattened to (rows*W, Cin).

    variant[kw][p, :] == x[row(p), col(p) + (kw - 1) * d, :], zero where the column is out of
    range (i.e. the conv's zero padding).  Implemented with an XLU sublane roll + a column mask
    so no misaligned slice / relayout copies are generated.
    """
    n, W, Cin = x3d.shape
    N = n * W
    xf = x3d.reshape(N, Cin)                                   # free: W % 8 == 0 is enforced
    col = lax.broadcasted_iota(jnp.int32, (N, 1), 0) % W       # column index of each flat row
    zero = jnp.zeros((), xf.dtype)
    # kw = 0 needs x[., c - d]  -> roll "right" by d, zero the first d columns of every row
    x_l = jnp.where(col >= d, pltpu.roll(xf, shift=d, axis=0), zero)
    # kw = 2 needs x[., c + d]  -> roll "left" by d, zero the last d columns of every row
    x_r = jnp.where(col < W - d, pltpu.roll(xf, shift=N - d, axis=0), zero)
    return (x_l, xf, x_r)


def _rebnconv_kernel(xc_ref, xu_ref, xd_ref, w_ref, scale_ref, bias_ref,
                     o_ref, acc_ref, *, d, TH, W, nH):
    # xc_ref:    (1, TH, W, Cin)   current TH input rows (unpadded image rows)
    # xu_ref:    (1, d,  W, Cin)   d rows just above the tile (clamped copy at the image top)
    # xd_ref:    (1, d,  W, Cin)   d rows just below the tile (clamped copy at the image bottom)
    # w_ref:     (3, 3, Cin, Cout) conv weights, HWIO
    # scale_ref: (1, Cout)         folded BN scale            bias_ref: (1, Cout) folded bias
    # o_ref:     (1, TH*W, Cout)   lane-dense flat output slab
    # acc_ref:   (TH*W, Cout)      f32 VMEM accumulator scratch
    h = pl.program_id(1)

    def mm(x2d, kh, kw):
        # Operands stay in the activation dtype (bf16 -> full-rate MXU); accumulate in f32.
        return jnp.dot(x2d, w_ref[kh, kw], preferred_element_type=jnp.float32)

    # Column-shift variants (kw = 0, 1, 2) of the current tile, each (TH*W, Cin).
    xc = _shifted_variants(xc_ref[0], d)
    n_main = (TH - d) * W                      # output rows that do not need the row halo

    # kh = 1 (same input row): covers every output row; initializes the accumulator.
    acc_ref[...] = mm(xc[1], 1, 1)
    acc_ref[...] += mm(xc[0], 1, 0)
    acc_ref[...] += mm(xc[2], 1, 2)

    # kh = 0 (input row r - d): output rows [d, TH) come from current-tile rows [0, TH-d).
    if n_main > 0:
        for kw in range(3):
            acc_ref[pl.ds(d * W, n_main), :] += mm(xc[kw][:n_main], 0, kw)

    # ... and output rows [0, d) come from the halo above (zero padding at the image top).
    @pl.when(h > 0)
    def _():
        xu = _shifted_variants(xu_ref[0], d)   # each (d*W, Cin)
        for kw in range(3):
            acc_ref[pl.ds(0, d * W), :] += mm(xu[kw], 0, kw)

    # kh = 2 (input row r + d): output rows [0, TH-d) come from current-tile rows [d, TH).
    if n_main > 0:
        for kw in range(3):
            acc_ref[pl.ds(0, n_main), :] += mm(xc[kw][d * W:d * W + n_main], 2, kw)

    # ... and output rows [TH-d, TH) come from the halo below (zero padding at the bottom).
    @pl.when(h < nH - 1)
    def _():
        xd = _shifted_variants(xd_ref[0], d)   # each (d*W, Cin)
        for kw in range(3):
            acc_ref[pl.ds(n_main, d * W), :] += mm(xd[kw], 2, kw)

    # Folded BatchNorm (inference) + conv bias, ReLU, cast only at the final store.
    y = acc_ref[...] * scale_ref[0] + bias_ref[0]
    o_ref[0] = jnp.maximum(y, 0.0).astype(o_ref.dtype)


def _vmem_bytes_estimate(TH, W, Cin, Cout, d, itemsize):
    x_tile = TH * W * Cin * itemsize
    halo = 2 * d * W * Cin * itemsize
    wts = 9 * Cin * Cout * itemsize
    out_tile = TH * W * Cout * itemsize
    acc = TH * W * Cout * 4
    # double-buffered pipeline blocks + f32 accumulator + in-flight kw variants of the tile
    return 2 * (x_tile + halo + wts + out_tile) + acc + 3 * x_tile


def _pick_tile_rows(H, W, Cin, Cout, d, itemsize, budget_bytes=16 << 20):
    best = None
    for th in range(d, H + 1, d):
        if H % th:
            continue
        if _vmem_bytes_estimate(th, W, Cin, Cout, d, itemsize) <= budget_bytes:
            best = th                          # keep the largest tile under budget
    if best is None:                           # even the smallest tile blows the budget
        best = next(th for th in range(d, H + 1, d) if H % th == 0)
    return best


def rebnconv_forward_nhwc(x_nhwc, w_hwio, scale, bias, *, dirate=1, tile_rows=None):
    """Fused Conv3x3(dilation=dirate, padding=dirate) + folded BN + ReLU.  NHWC in / NHWC out.

    x_nhwc: (B, H, W, Cin);  w_hwio: (3, 3, Cin, Cout);  scale, bias: (Cout,) folded BN params.
    """
    B, H, W, Cin = x_nhwc.shape
    Cout = w_hwio.shape[-1]
    d = int(dirate)

    if W % 8 != 0 or H % d != 0 or d >= W:
        # TODO(synk): padded fallback for ragged spatial sizes.
        raise NotImplementedError(
            "rebnconv_forward_nhwc requires W % 8 == 0, H % dirate == 0 and dirate < W")

    itemsize = jnp.dtype(x_nhwc.dtype).itemsize
    TH = tile_rows if tile_rows is not None else _pick_tile_rows(H, W, Cin, Cout, d, itemsize)
    if H % TH or TH % d:
        raise ValueError(f"tile_rows={TH} must divide H={H} and be a multiple of dirate={d}")
    nH = H // TH
    k = TH // d                                # halo-block stride, in units of d-row blocks

    w_hwio = w_hwio.astype(x_nhwc.dtype)       # matmul operands share the activation dtype
    scale2 = scale.astype(jnp.float32).reshape(1, Cout)
    bias2 = bias.astype(jnp.float32).reshape(1, Cout)

    kernel = functools.partial(_rebnconv_kernel, d=d, TH=TH, W=W, nH=nH)
    vmem_limit = int(min(max(2 * _vmem_bytes_estimate(TH, W, Cin, Cout, d, itemsize),
                             16 << 20), 48 << 20))

    out_flat = pl.pallas_call(
        kernel,
        out_shape=jax.ShapeDtypeStruct((B, H * W, Cout), x_nhwc.dtype),
        grid_spec=pltpu.PrefetchScalarGridSpec(
            num_scalar_prefetch=0,
            grid=(B, nH),
            in_specs=[
                # current TH rows of the unpadded input
                pl.BlockSpec((1, TH, W, Cin), lambda b, h: (b, h, 0, 0)),
                # d-row halo above (clamped at the top; its contribution is skipped in-kernel)
                pl.BlockSpec((1, d, W, Cin),
                             lambda b, h: (b, jnp.maximum(h * k - 1, 0), 0, 0)),
                # d-row halo below (clamped at the bottom; its contribution is skipped in-kernel)
                pl.BlockSpec((1, d, W, Cin),
                             lambda b, h: (b, jnp.minimum((h + 1) * k, H // d - 1), 0, 0)),
                pl.BlockSpec((3, 3, Cin, Cout), lambda b, h: (0, 0, 0, 0)),
                pl.BlockSpec((1, Cout), lambda b, h: (0, 0)),
                pl.BlockSpec((1, Cout), lambda b, h: (0, 0)),
            ],
            out_specs=pl.BlockSpec((1, TH * W, Cout), lambda b, h: (b, h, 0)),
            scratch_shapes=[pltpu.VMEM((TH * W, Cout), jnp.float32)],
        ),
        compiler_params=pltpu.CompilerParams(
            dimension_semantics=("parallel", "parallel"),
            vmem_limit_bytes=vmem_limit,
        ),
    )(x_nhwc, x_nhwc, x_nhwc, w_hwio, scale2, bias2)

    return out_flat.reshape(B, H, W, Cout)     # free reshape of the lane-dense flat slab


def rebnconv_forward(x_nchw, conv_w, conv_b, bn_gamma, bn_beta, bn_mean, bn_var,
                     *, dirate=1, eps=1e-5, tile_rows=None):
    """PyTorch-shaped entry point: x (B, Cin, H, W), conv_w (Cout, Cin, 3, 3) -> (B, Cout, H, W).

    BatchNorm uses inference (running-stats) semantics folded into a per-channel scale/bias.
    TODO(synk): training-mode BN (batch statistics) is not reproduced.
    NOTE: in a real NHWC network do these layout/weight transposes once at load time and call
    rebnconv_forward_nhwc directly — here they are per-call HBM passes kept only for parity.
    """
    inv_std = 1.0 / jnp.sqrt(bn_var + eps)
    scale = bn_gamma * inv_std                              # (Cout,)
    bias = bn_beta + (conv_b - bn_mean) * scale             # (Cout,)

    x_nhwc = jnp.transpose(x_nchw, (0, 2, 3, 1))
    w_hwio = jnp.transpose(conv_w, (2, 3, 1, 0))            # OIHW -> HWIO
    out_nhwc = rebnconv_forward_nhwc(x_nhwc, w_hwio, scale, bias,
                                     dirate=dirate, tile_rows=tile_rows)
    return jnp.transpose(out_nhwc, (0, 3, 1, 2))


def _reference_forward(x_nchw, conv_w, conv_b, bn_gamma, bn_beta, bn_mean, bn_var,
                       *, dirate=1, eps=1e-5):
    """Pure-JAX reference (lax conv) for correctness check."""
    conv = lax.conv_general_dilated(
        x_nchw.astype(jnp.float32), conv_w.astype(jnp.float32),
        window_strides=(1, 1), padding=((dirate, dirate), (dirate, dirate)),
        rhs_dilation=(dirate, dirate),
        dimension_numbers=("NCHW", "OIHW", "NCHW"),
    ) + conv_b[None, :, None, None]
    inv_std = 1.0 / jnp.sqrt(bn_var + eps)
    y = (conv - bn_mean[None, :, None, None]) * (bn_gamma * inv_std)[None, :, None, None] \
        + bn_beta[None, :, None, None]
    return jnp.maximum(y, 0.0).astype(x_nchw.dtype)


if __name__ == "__main__":
    key = jax.random.PRNGKey(0)
    B, Cin, Cout, H, W = 2, 4, 8, 16, 16

    k_x, k_w, k_b, k_g, k_bt, k_m, k_v = jax.random.split(key, 7)
    x = jax.random.normal(k_x, (B, Cin, H, W), dtype=jnp.float32)

    # Deterministic synthetic parameters (nn.Conv2d(4, 8, 3) + nn.BatchNorm2d(8) shapes).
    conv_w = jax.random.normal(k_w, (Cout, Cin, 3, 3), dtype=jnp.float32) * 0.1
    conv_b = jax.random.normal(k_b, (Cout,), dtype=jnp.float32) * 0.1
    bn_gamma = 1.0 + 0.1 * jax.random.normal(k_g, (Cout,), dtype=jnp.float32)
    bn_beta = 0.1 * jax.random.normal(k_bt, (Cout,), dtype=jnp.float32)
    bn_mean = 0.1 * jax.random.normal(k_m, (Cout,), dtype=jnp.float32)
    bn_var = jnp.abs(jax.random.normal(k_v, (Cout,), dtype=jnp.float32)) + 0.5

    # (dirate, tile_rows): exercise multi-tile row halos, dilation > 1, and single-tile clamping.
    for dirate, tile_rows in ((1, 8), (2, 8), (1, None)):
        out = rebnconv_forward(x, conv_w, conv_b, bn_gamma, bn_beta, bn_mean, bn_var,
                               dirate=dirate, tile_rows=tile_rows)
        out = jax.block_until_ready(out)
        ref = _reference_forward(x, conv_w, conv_b, bn_gamma, bn_beta, bn_mean, bn_var,
                                 dirate=dirate)
        assert out.shape == (B, Cout, H, W)
        err = float(jnp.max(jnp.abs(out - ref)))
        assert err < 1e-3, f"dirate={dirate} tile_rows={tile_rows} max_err={err}"

    print("KERNEL_OK")
</pallas_src>

<mosaic_0001>
module attributes {stable_mosaic.version = 11 : i64} {
  func.func @_rebnconv_kernel(%arg0: i32, %arg1: i32, %arg2: memref<1x8x16x4xf32, #tpu.memory_space<vmem>>, %arg3: memref<1x1x16x4xf32, #tpu.memory_space<vmem>>, %arg4: memref<1x1x16x4xf32, #tpu.memory_space<vmem>>, %arg5: memref<3x3x4x8xf32, #tpu.memory_space<vmem>>, %arg6: memref<1x8xf32, #tpu.memory_space<vmem>>, %arg7: memref<1x8xf32, #tpu.memory_space<vmem>>, %arg8: memref<1x128x8xf32, #tpu.memory_space<vmem>>, %arg9: memref<128x8xf32, #tpu.memory_space<vmem>>) attributes {dimension_semantics = [#tpu.dimension_semantics<parallel>, #tpu.dimension_semantics<parallel>], iteration_bounds = array<i64: 2, 2>, scalar_prefetch = 0 : i64, scratch_operands = 1 : i64, tpu.core_type = #tpu.core_type<tc>, window_params = [{transform_indices = @transform_0, window_bounds = array<i64: 1, 8, 16, 4>}, {transform_indices = @transform_1, window_bounds = array<i64: 1, 1, 16, 4>}, {transform_indices = @transform_2, window_bounds = array<i64: 1, 1, 16, 4>}, {pipeline_mode = #tpu.pipeline_mode<synchronous>, transform_indices = @transform_3, window_bounds = array<i64: 3, 3, 4, 8>}, {pipeline_mode = #tpu.pipeline_mode<synchronous>, transform_indices = @transform_4, window_bounds = array<i64: 1, 8>}, {pipeline_mode = #tpu.pipeline_mode<synchronous>, transform_indices = @transform_5, window_bounds = array<i64: 1, 8>}, {transform_indices = @transform_6, window_bounds = array<i64: 1, 128, 8>}]} {
    %c0 = arith.constant 0 : index
    %c0_0 = arith.constant 0 : index
    %c0_1 = arith.constant 0 : index
    %c0_2 = arith.constant 0 : index
    %0 = vector.load %arg2[%c0, %c0_0, %c0_1, %c0_2] : memref<1x8x16x4xf32, #tpu.memory_space<vmem>>, vector<1x8x16x4xf32>
    %1 = vector.shape_cast %0 : vector<1x8x16x4xf32> to vector<8x16x4xf32>
    %2 = vector.shape_cast %1 : vector<8x16x4xf32> to vector<128x4xf32>
    %3 = tpu.iota {dimensions = array<i32: 0>} : vector<128x1xi32>
    %c16_i32 = arith.constant 16 : i32
    %c0_i32 = arith.constant 0 : i32
    %4 = arith.cmpi eq, %c16_i32, %c0_i32 : i32
    %c1_i32 = arith.constant 1 : i32
    %5 = arith.select %4, %c1_i32, %c16_i32 : i32
    %6 = vector.broadcast %5 : i32 to vector<128x1xi32>
    %7 = arith.remsi %3, %6 : vector<128x1xi32>
    %c0_i32_3 = arith.constant 0 : i32
    %8 = vector.broadcast %c0_i32_3 : i32 to vector<128x1xi32>
    %9 = arith.cmpi ne, %7, %8 : vector<128x1xi32>
    %c0_i32_4 = arith.constant 0 : i32
    %10 = vector.broadcast %c0_i32_4 : i32 to vector<128x1xi32>
    %11 = arith.cmpi slt, %7, %10 : vector<128x1xi32>
    %c0_i32_5 = arith.constant 0 : i32
    %12 = arith.cmpi slt, %5, %c0_i32_5 : i32
    %13 = vector.broadcast %12 : i1 to vector<128x1xi1>
    %14 = vector.broadcast %13 : vector<128x1xi1> to vector<128x1xi1>
    %15 = arith.xori %11, %14 : vector<128x1xi1>
    %16 = arith.andi %15, %9 : vector<128x1xi1>
    %17 = vector.broadcast %5 : i32 to vector<128x1xi32>
    %18 = arith.addi %7, %17 : vector<128x1xi32>
    %19 = arith.select %16, %18, %7 : vector<128x1xi1>, vector<128x1xi32>
    %c1_i32_6 = arith.constant 1 : i32
    %20 = vector.broadcast %c1_i32_6 : i32 to vector<128x1xi32>
    %21 = arith.cmpi sge, %19, %20 : vector<128x1xi32>
    %c1_i32_7 = arith.constant 1 : i32
    %22 = tpu.dynamic_rotate %2 by %c1_i32_7 dim 0 : vector<128x4xf32>, i32 -> vector<128x4xf32>
    %cst = arith.constant 0.000000e+00 : f32
    %23 = vector.shape_cast %21 : vector<128x1xi1> to vector<128x1xi1>
    %24 = vector.broadcast %23 : vector<128x1xi1> to vector<128x4xi1>
    %25 = vector.broadcast %cst : f32 to vector<128x4xf32>
    %26 = arith.select %24, %22, %25 : vector<128x4xi1>, vector<128x4xf32>
    %c15_i32 = arith.constant 15 : i32
    %27 = vector.broadcast %c15_i32 : i32 to vector<128x1xi32>
    %28 = arith.cmpi slt, %19, %27 : vector<128x1xi32>
    %c127_i32 = arith.constant 127 : i32
    %29 = tpu.dynamic_rotate %2 by %c127_i32 dim 0 : vector<128x4xf32>, i32 -> vector<128x4xf32>
    %cst_8 = arith.constant 0.000000e+00 : f32
    %30 = vector.shape_cast %28 : vector<128x1xi1> to vector<128x1xi1>
    %31 = vector.broadcast %30 : vector<128x1xi1> to vector<128x4xi1>
    %32 = vector.broadcast %cst_8 : f32 to vector<128x4xf32>
    %33 = arith.select %31, %29, %32 : vector<128x4xi1>, vector<128x4xf32>
    %c1 = arith.constant 1 : index
    %c1_9 = arith.constant 1 : index
    %c0_10 = arith.constant 0 : index
    %c0_11 = arith.constant 0 : index
    %34 = vector.load %arg5[%c1, %c1_9, %c0_10, %c0_11] : memref<3x3x4x8xf32, #tpu.memory_space<vmem>>, vector<1x1x4x8xf32>
    %35 = vector.shape_cast %34 : vector<1x1x4x8xf32> to vector<4x8xf32>
    %cst_12 = arith.constant dense<0.000000e+00> : vector<128x8xf32>
    %36 = tpu.matmul %2, %35, %cst_12 {dimension_numbers = #tpu.dot_dimension_numbers<[1], [0], [0], [1], [0, 0, 1, 1], [], []>} : vector<128x4xf32>, vector<4x8xf32>, vector<128x8xf32> -> vector<128x8xf32>
    %c0_13 = arith.constant 0 : index
    %c0_14 = arith.constant 0 : index
    %37 = vector.load %arg9[%c0_13, %c0_14] : memref<128x8xf32, #tpu.memory_space<vmem>>, vector<128x8xf32>
    tpu.vector_store %arg9[%c0_13, %c0_14], %36 {strides = array<i32>} : memref<128x8xf32, #tpu.memory_space<vmem>>, vector<128x8xf32>,
    %c0_15 = arith.constant 0 : index
    %c0_16 = arith.constant 0 : index
    %38 = vector.load %arg9[%c0_15, %c0_16] : memref<128x8xf32, #tpu.memory_space<vmem>>, vector<128x8xf32>
    %c1_17 = arith.constant 1 : index
    %c0_18 = arith.constant 0 : index
    %c0_19 = arith.constant 0 : index
    %c0_20 = arith.constant 0 : index
    %39 = vector.load %arg5[%c1_17, %c0_18, %c0_19, %c0_20] : memref<3x3x4x8xf32, #tpu.memory_space<vmem>>, vector<1x1x4x8xf32>
    %40 = vector.shape_cast %39 : vector<1x1x4x8xf32> to vector<4x8xf32>
    %cst_21 = arith.constant dense<0.000000e+00> : vector<128x8xf32>
    %41 = tpu.matmul %26, %40, %cst_21 {dimension_numbers = #tpu.dot_dimension_numbers<[1], [0], [0], [1], [0, 0, 1, 1], [], []>} : vector<128x4xf32>, vector<4x8xf32>, vector<128x8xf32> -> vector<128x8xf32>
    %42 = arith.addf %38, %41 : vector<128x8xf32>
    %c0_22 = arith.constant 0 : index
    %c0_23 = arith.constant 0 : index
    %43 = vector.load %arg9[%c0_22, %c0_23] : memref<128x8xf32, #tpu.memory_space<vmem>>, vector<128x8xf32>
    tpu.vector_store %arg9[%c0_22, %c0_23], %42 {strides = array<i32>} : memref<128x8xf32, #tpu.memory_space<vmem>>, vector<128x8xf32>,
    %c0_24 = arith.constant 0 : index
    %c0_25 = arith.constant 0 : index
    %44 = vector.load %arg9[%c0_24, %c0_25] : memref<128x8xf32, #tpu.memory_space<vmem>>, vector<128x8xf32>
    %c1_26 = arith.constant 1 : index
    %c2 = arith.constant 2 : index
    %c0_27 = arith.constant 0 : index
    %c0_28 = arith.constant 0 : index
    %45 = vector.load %arg5[%c1_26, %c2, %c0_27, %c0_28] : memref<3x3x4x8xf32, #tpu.memory_space<vmem>>, vector<1x1x4x8xf32>
    %46 = vector.shape_cast %45 : vector<1x1x4x8xf32> to vector<4x8xf32>
    %cst_29 = arith.constant dense<0.000000e+00> : vector<128x8xf32>
    %47 = tpu.matmul %33, %46, %cst_29 {dimension_numbers = #tpu.dot_dimension_numbers<[1], [0], [0], [1], [0, 0, 1, 1], [], []>} : vector<128x4xf32>, vector<4x8xf32>, vector<128x8xf32> -> vector<128x8xf32>
    %48 = arith.addf %44, %47 : vector<128x8xf32>
    %c0_30 = arith.constant 0 : index
    %c0_31 = arith.constant 0 : index
    %49 = vector.load %arg9[%c0_30, %c0_31] : memref<128x8xf32, #tpu.memory_space<vmem>>, vector<128x8xf32>
    tpu.vector_store %arg9[%c0_30, %c0_31], %48 {strides = array<i32>} : memref<128x8xf32, #tpu.memory_space<vmem>>, vector<128x8xf32>,
    %c16 = arith.constant 16 : index
    %c0_32 = arith.constant 0 : index
    %50 = vector.load %arg9[%c16, %c0_32] : memref<128x8xf32, #tpu.memory_space<vmem>>, vector<112x8xf32>
    %51 = vector.extract_strided_slice %26 {offsets = [0, 0], sizes = [112, 4], strides = [1, 1]} : vector<128x4xf32> to vector<112x4xf32>
    %c0_33 = arith.constant 0 : index
    %c0_34 = arith.constant 0 : index
    %c0_35 = arith.constant 0 : index
    %c0_36 = arith.constant 0 : index
    %52 = vector.load %arg5[%c0_33, %c0_34, %c0_35, %c0_36] : memref<3x3x4x8xf32, #tpu.memory_space<vmem>>, vector<1x1x4x8xf32>
    %53 = vector.shape_cast %52 : vector<1x1x4x8xf32> to vector<4x8xf32>
    %cst_37 = arith.constant dense<0.000000e+00> : vector<112x8xf32>
    %54 = tpu.matmul %51, %53, %cst_37 {dimension_numbers = #tpu.dot_dimension_numbers<[1], [0], [0], [1], [0, 0, 1, 1], [], []>} : vector<112x4xf32>, vector<4x8xf32>, vector<112x8xf32> -> vector<112x8xf32>
    %55 = arith.addf %50, %54 : vector<112x8xf32>
    %c16_38 = arith.constant 16 : index
    %c0_39 = arith.constant 0 : index
    %56 = vector.load %arg9[%c16_38, %c0_39] : memref<128x8xf32, #tpu.memory_space<vmem>>, vector<112x8xf32>
    tpu.vector_store %arg9[%c16_38, %c0_39], %55 {strides = array<i32>} : memref<128x8xf32, #tpu.memory_space<vmem>>, vector<112x8xf32>,
    %c16_40 = arith.constant 16 : index
    %c0_41 = arith.constant 0 : index
    %57 = vector.load %arg9[%c16_40, %c0_41] : memref<128x8xf32, #tpu.memory_space<vmem>>, vector<112x8xf32>
    %58 = vector.extract_strided_slice %2 {offsets = [0, 0], sizes = [112, 4], strides = [1, 1]} : vector<128x4xf32> to vector<112x4xf32>
    %c0_42 = arith.constant 0 : index
    %c1_43 = arith.constant 1 : index
    %c0_44 = arith.constant 0 : index
    %c0_45 = arith.constant 0 : index
    %59 = vector.load %arg5[%c0_42, %c1_43, %c0_44, %c0_45] : memref<3x3x4x8xf32, #tpu.memory_space<vmem>>, vector<1x1x4x8xf32>
    %60 = vector.shape_cast %59 : vector<1x1x4x8xf32> to vector<4x8xf32>
    %cst_46 = arith.constant dense<0.000000e+00> : vector<112x8xf32>
    %61 = tpu.matmul %58, %60, %cst_46 {dimension_numbers = #tpu.dot_dimension_numbers<[1], [0], [0], [1], [0, 0, 1, 1], [], []>} : vector<112x4xf32>, vector<4x8xf32>, vector<112x8xf32> -> vector<112x8xf32>
    %62 = arith.addf %57, %61 : vector<112x8xf32>
    %c16_47 = arith.constant 16 : index
    %c0_48 = arith.constant 0 : index
    %63 = vector.load %arg9[%c16_47, %c0_48] : memref<128x8xf32, #tpu.memory_space<vmem>>, vector<112x8xf32>
    tpu.vector_store %arg9[%c16_47, %c0_48], %62 {strides = array<i32>} : memref<128x8xf32, #tpu.memory_space<vmem>>, vector<112x8xf32>,
    %c16_49 = arith.constant 16 : index
    %c0_50 = arith.constant 0 : index
    %64 = vector.load %arg9[%c16_49, %c0_50] : memref<128x8xf32, #tpu.memory_space<vmem>>, vector<112x8xf32>
    %65 = vector.extract_strided_slice %33 {offsets = [0, 0], sizes = [112, 4], strides = [1, 1]} : vector<128x4xf32> to vector<112x4xf32>
    %c0_51 = arith.constant 0 : index
    %c2_52 = arith.constant 2 : index
    %c0_53 = arith.constant 0 : index
    %c0_54 = arith.constant 0 : index
    %66 = vector.load %arg5[%c0_51, %c2_52, %c0_53, %c0_54] : memref<3x3x4x8xf32, #tpu.memory_space<vmem>>, vector<1x1x4x8xf32>
    %67 = vector.shape_cast %66 : vector<1x1x4x8xf32> to vector<4x8xf32>
    %cst_55 = arith.constant dense<0.000000e+00> : vector<112x8xf32>
    %68 = tpu.matmul %65, %67, %cst_55 {dimension_numbers = #tpu.dot_dimension_numbers<[1], [0], [0], [1], [0, 0, 1, 1], [], []>} : vector<112x4xf32>, vector<4x8xf32>, vector<112x8xf32> -> vector<112x8xf32>
    %69 = arith.addf %64, %68 : vector<112x8xf32>
    %c16_56 = arith.constant 16 : index
    %c0_57 = arith.constant 0 : index
    %70 = vector.load %arg9[%c16_56, %c0_57] : memref<128x8xf32, #tpu.memory_space<vmem>>, vector<112x8xf32>
    tpu.vector_store %arg9[%c16_56, %c0_57], %69 {strides = array<i32>} : memref<128x8xf32, #tpu.memory_space<vmem>>, vector<112x8xf32>,
    %c0_i32_58 = arith.constant 0 : i32
    %71 = arith.cmpi sgt, %arg1, %c0_i32_58 : i32
    %72 = arith.extui %71 : i1 to i32
    %c0_i32_59 = arith.constant 0 : i32
    %73 = arith.cmpi ne, %72, %c0_i32_59 : i32
    scf.if %73 {
      %c0_99 = arith.constant 0 : index
      %c0_100 = arith.constant 0 : index
      %c0_101 = arith.constant 0 : index
      %c0_102 = arith.constant 0 : index
      %114 = vector.load %arg3[%c0_99, %c0_100, %c0_101, %c0_102] : memref<1x1x16x4xf32, #tpu.memory_space<vmem>>, vector<1x1x16x4xf32>
      %115 = vector.shape_cast %114 : vector<1x1x16x4xf32> to vector<1x16x4xf32>
      %116 = vector.shape_cast %115 : vector<1x16x4xf32> to vector<16x4xf32>
      %117 = tpu.iota {dimensions = array<i32: 0>} : vector<16x1xi32>
      %c16_i32_103 = arith.constant 16 : i32
      %c0_i32_104 = arith.constant 0 : i32
      %118 = arith.cmpi eq, %c16_i32_103, %c0_i32_104 : i32
      %c1_i32_105 = arith.constant 1 : i32
      %119 = arith.select %118, %c1_i32_105, %c16_i32_103 : i32
      %120 = vector.broadcast %119 : i32 to vector<16x1xi32>
      %121 = arith.remsi %117, %120 : vector<16x1xi32>
      %c0_i32_106 = arith.constant 0 : i32
      %122 = vector.broadcast %c0_i32_106 : i32 to vector<16x1xi32>
      %123 = arith.cmpi ne, %121, %122 : vector<16x1xi32>
      %c0_i32_107 = arith.constant 0 : i32
      %124 = vector.broadcast %c0_i32_107 : i32 to vector<16x1xi32>
      %125 = arith.cmpi slt, %121, %124 : vector<16x1xi32>
      %c0_i32_108 = arith.constant 0 : i32
      %126 = arith.cmpi slt, %119, %c0_i32_108 : i32
      %127 = vector.broadcast %126 : i1 to vector<16x1xi1>
      %128 = vector.broadcast %127 : vector<16x1xi1> to vector<16x1xi1>
      %129 = arith.xori %125, %128 : vector<16x1xi1>
      %130 = arith.andi %129, %123 : vector<16x1xi1>
      %131 = vector.broadcast %119 : i32 to vector<16x1xi32>
      %132 = arith.addi %121, %131 : vector<16x1xi32>
      %133 = arith.select %130, %132, %121 : vector<16x1xi1>, vector<16x1xi32>
      %c1_i32_109 = arith.constant 1 : i32
      %134 = vector.broadcast %c1_i32_109 : i32 to vector<16x1xi32>
      %135 = arith.cmpi sge, %133, %134 : vector<16x1xi32>
      %c1_i32_110 = arith.constant 1 : i32
      %136 = tpu.dynamic_rotate %116 by %c1_i32_110 dim 0 : vector<16x4xf32>, i32 -> vector<16x4xf32>
      %cst_111 = arith.constant 0.000000e+00 : f32
      %137 = vector.shape_cast %135 : vector<16x1xi1> to vector<16x1xi1>
      %138 = vector.broadcast %137 : vector<16x1xi1> to vector<16x4xi1>
      %139 = vector.broadcast %cst_111 : f32 to vector<16x4xf32>
      %140 = arith.select %138, %136, %139 : vector<16x4xi1>, vector<16x4xf32>
      %c15_i32_112 = arith.constant 15 : i32
      %141 = vector.broadcast %c15_i32_112 : i32 to vector<16x1xi32>
      %142 = arith.cmpi slt, %133, %141 : vector<16x1xi32>
      %c15_i32_113 = arith.constant 15 : i32
      %143 = tpu.dynamic_rotate %116 by %c15_i32_113 dim 0 : vector<16x4xf32>, i32 -> vector<16x4xf32>
      %cst_114 = arith.constant 0.000000e+00 : f32
      %144 = vector.shape_cast %142 : vector<16x1xi1> to vector<16x1xi1>
      %145 = vector.broadcast %144 : vector<16x1xi1> to vector<16x4xi1>
      %146 = vector.broadcast %cst_114 : f32 to vector<16x4xf32>
      %147 = arith.select %145, %143, %146 : vector<16x4xi1>, vector<16x4xf32>
      %c0_115 = arith.constant 0 : index
      %c0_116 = arith.constant 0 : index
      %148 = vector.load %arg9[%c0_115, %c0_116] : memref<128x8xf32, #tpu.memory_space<vmem>>, vector<16x8xf32>
      %c0_117 = arith.constant 0 : index
      %c0_118 = arith.constant 0 : index
      %c0_119 = arith.constant 0 : index
      %c0_120 = arith.constant 0 : index
      %149 = vector.load %arg5[%c0_117, %c0_118, %c0_119, %c0_120] : memref<3x3x4x8xf32, #tpu.memory_space<vmem>>, vector<1x1x4x8xf32>
      %150 = vector.shape_cast %149 : vector<1x1x4x8xf32> to vector<4x8xf32>
      %cst_121 = arith.constant dense<0.000000e+00> : vector<16x8xf32>
      %151 = tpu.matmul %140, %150, %cst_121 {dimension_numbers = #tpu.dot_dimension_numbers<[1], [0], [0], [1], [0, 0, 1, 1], [], []>} : vector<16x4xf32>, vector<4x8xf32>, vector<16x8xf32> -> vector<16x8xf32>
      %152 = arith.addf %148, %151 : vector<16x8xf32>
      %c0_122 = arith.constant 0 : index
      %c0_123 = arith.constant 0 : index
      %153 = vector.load %arg9[%c0_122, %c0_123] : memref<128x8xf32, #tpu.memory_space<vmem>>, vector<16x8xf32>
      tpu.vector_store %arg9[%c0_122, %c0_123], %152 {strides = array<i32>} : memref<128x8xf32, #tpu.memory_space<vmem>>, vector<16x8xf32>,
      %c0_124 = arith.constant 0 : index
      %c0_125 = arith.constant 0 : index
      %154 = vector.load %arg9[%c0_124, %c0_125] : memref<128x8xf32, #tpu.memory_space<vmem>>, vector<16x8xf32>
      %c0_126 = arith.constant 0 : index
      %c1_127 = arith.constant 1 : index
      %c0_128 = arith.constant 0 : index
      %c0_129 = arith.constant 0 : index
      %155 = vector.load %arg5[%c0_126, %c1_127, %c0_128, %c0_129] : memref<3x3x4x8xf32, #tpu.memory_space<vmem>>, vector<1x1x4x8xf32>
      %156 = vector.shape_cast %155 : vector<1x1x4x8xf32> to vector<4x8xf32>
      %cst_130 = arith.constant dense<0.000000e+00> : vector<16x8xf32>
      %157 = tpu.matmul %116, %156, %cst_130 {dimension_numbers = #tpu.dot_dimension_numbers<[1], [0], [0], [1], [0, 0, 1, 1], [], []>} : vector<16x4xf32>, vector<4x8xf32>, vector<16x8xf32> -> vector<16x8xf32>
      %158 = arith.addf %154, %157 : vector<16x8xf32>
      %c0_131 = arith.constant 0 : index
      %c0_132 = arith.constant 0 : index
      %159 = vector.load %arg9[%c0_131, %c0_132] : memref<128x8xf32, #tpu.memory_space<vmem>>, vector<16x8xf32>
      tpu.vector_store %arg9[%c0_131, %c0_132], %158 {strides = array<i32>} : memref<128x8xf32, #tpu.memory_space<vmem>>, vector<16x8xf32>,
      %c0_133 = arith.constant 0 : index
      %c0_134 = arith.constant 0 : index
      %160 = vector.load %arg9[%c0_133, %c0_134] : memref<128x8xf32, #tpu.memory_space<vmem>>, vector<16x8xf32>
      %c0_135 = arith.constant 0 : index
      %c2_136 = arith.constant 2 : index
      %c0_137 = arith.constant 0 : index
      %c0_138 = arith.constant 0 : index
      %161 = vector.load %arg5[%c0_135, %c2_136, %c0_137, %c0_138] : memref<3x3x4x8xf32, #tpu.memory_space<vmem>>, vector<1x1x4x8xf32>
      %162 = vector.shape_cast %161 : vector<1x1x4x8xf32> to vector<4x8xf32>
      %cst_139 = arith.constant dense<0.000000e+00> : vector<16x8xf32>
      %163 = tpu.matmul %147, %162, %cst_139 {dimension_numbers = #tpu.dot_dimension_numbers<[1], [0], [0], [1], [0, 0, 1, 1], [], []>} : vector<16x4xf32>, vector<4x8xf32>, vector<16x8xf32> -> vector<16x8xf32>
      %164 = arith.addf %160, %163 : vector<16x8xf32>
      %c0_140 = arith.constant 0 : index
      %c0_141 = arith.constant 0 : index
      %165 = vector.load %arg9[%c0_140, %c0_141] : memref<128x8xf32, #tpu.memory_space<vmem>>, vector<16x8xf32>
      tpu.vector_store %arg9[%c0_140, %c0_141], %164 {strides = array<i32>} : memref<128x8xf32, #tpu.memory_space<vmem>>, vector<16x8xf32>,
    } else {
    }
    %c0_60 = arith.constant 0 : index
    %c0_61 = arith.constant 0 : index
    %74 = vector.load %arg9[%c0_60, %c0_61] : memref<128x8xf32, #tpu.memory_space<vmem>>, vector<112x8xf32>
    %75 = vector.extract_strided_slice %26 {offsets = [16, 0], sizes = [112, 4], strides = [1, 1]} : vector<128x4xf32> to vector<112x4xf32>
    %c2_62 = arith.constant 2 : index
    %c0_63 = arith.constant 0 : index
    %c0_64 = arith.constant 0 : index
    %c0_65 = arith.constant 0 : index
    %76 = vector.load %arg5[%c2_62, %c0_63, %c0_64, %c0_65] : memref<3x3x4x8xf32, #tpu.memory_space<vmem>>, vector<1x1x4x8xf32>
    %77 = vector.shape_cast %76 : vector<1x1x4x8xf32> to vector<4x8xf32>
    %cst_66 = arith.constant dense<0.000000e+00> : vector<112x8xf32>
    %78 = tpu.matmul %75, %77, %cst_66 {dimension_numbers = #tpu.dot_dimension_numbers<[1], [0], [0], [1], [0, 0, 1, 1], [], []>} : vector<112x4xf32>, vector<4x8xf32>, vector<112x8xf32> -> vector<112x8xf32>
    %79 = arith.addf %74, %78 : vector<112x8xf32>
    %c0_67 = arith.constant 0 : index
    %c0_68 = arith.constant 0 : index
    %80 = vector.load %arg9[%c0_67, %c0_68] : memref<128x8xf32, #tpu.memory_space<vmem>>, vector<112x8xf32>
    tpu.vector_store %arg9[%c0_67, %c0_68], %79 {strides = array<i32>} : memref<128x8xf32, #tpu.memory_space<vmem>>, vector<112x8xf32>,
    %c0_69 = arith.constant 0 : index
    %c0_70 = arith.constant 0 : index
    %81 = vector.load %arg9[%c0_69, %c0_70] : memref<128x8xf32, #tpu.memory_space<vmem>>, vector<112x8xf32>
    %82 = vector.extract_strided_slice %2 {offsets = [16, 0], sizes = [112, 4], strides = [1, 1]} : vector<128x4xf32> to vector<112x4xf32>
    %c2_71 = arith.constant 2 : index
    %c1_72 = arith.constant 1 : index
    %c0_73 = arith.constant 0 : index
    %c0_74 = arith.constant 0 : index
    %83 = vector.load %arg5[%c2_71, %c1_72, %c0_73, %c0_74] : memref<3x3x4x8xf32, #tpu.memory_space<vmem>>, vector<1x1x4x8xf32>
    %84 = vector.shape_cast %83 : vector<1x1x4x8xf32> to vector<4x8xf32>
    %cst_75 = arith.constant dense<0.000000e+00> : vector<112x8xf32>
    %85 = tpu.matmul %82, %84, %cst_75 {dimension_numbers = #tpu.dot_dimension_numbers<[1], [0], [0], [1], [0, 0, 1, 1], [], []>} : vector<112x4xf32>, vector<4x8xf32>, vector<112x8xf32> -> vector<112x8xf32>
    %86 = arith.addf %81, %85 : vector<112x8xf32>
    %c0_76 = arith.constant 0 : index
    %c0_77 = arith.constant 0 : index
    %87 = vector.load %arg9[%c0_76, %c0_77] : memref<128x8xf32, #tpu.memory_space<vmem>>, vector<112x8xf32>
    tpu.vector_store %arg9[%c0_76, %c0_77], %86 {strides = array<i32>} : memref<128x8xf32, #tpu.memory_space<vmem>>, vector<112x8xf32>,
    %c0_78 = arith.constant 0 : index
    %c0_79 = arith.constant 0 : index
    %88 = vector.load %arg9[%c0_78, %c0_79] : memref<128x8xf32, #tpu.memory_space<vmem>>, vector<112x8xf32>
    %89 = vector.extract_strided_slice %33 {offsets = [16, 0], sizes = [112, 4], strides = [1, 1]} : vector<128x4xf32> to vector<112x4xf32>
    %c2_80 = arith.constant 2 : index
    %c2_81 = arith.constant 2 : index
    %c0_82 = arith.constant 0 : index
    %c0_83 = arith.constant 0 : index
    %90 = vector.load %arg5[%c2_80, %c2_81, %c0_82, %c0_83] : memref<3x3x4x8xf32, #tpu.memory_space<vmem>>, vector<1x1x4x8xf32>
    %91 = vector.shape_cast %90 : vector<1x1x4x8xf32> to vector<4x8xf32>
    %cst_84 = arith.constant dense<0.000000e+00> : vector<112x8xf32>
    %92 = tpu.matmul %89, %91, %cst_84 {dimension_numbers = #tpu.dot_dimension_numbers<[1], [0], [0], [1], [0, 0, 1, 1], [], []>} : vector<112x4xf32>, vector<4x8xf32>, vector<112x8xf32> -> vector<112x8xf32>
    %93 = arith.addf %88, %92 : vector<112x8xf32>
    %c0_85 = arith.constant 0 : index
    %c0_86 = arith.constant 0 : index
    %94 = vector.load %arg9[%c0_85, %c0_86] : memref<128x8xf32, #tpu.memory_space<vmem>>, vector<112x8xf32>
    tpu.vector_store %arg9[%c0_85, %c0_86], %93 {strides = array<i32>} : memref<128x8xf32, #tpu.memory_space<vmem>>, vector<112x8xf32>,
    %c1_i32_87 = arith.constant 1 : i32
    %95 = arith.cmpi slt, %arg1, %c1_i32_87 : i32
    %96 = arith.extui %95 : i1 to i32
    %c0_i32_88 = arith.constant 0 : i32
    %97 = arith.cmpi ne, %96, %c0_i32_88 : i32
    scf.if %97 {
      %c0_99 = arith.constant 0 : index
      %c0_100 = arith.constant 0 : index
      %c0_101 = arith.constant 0 : index
      %c0_102 = arith.constant 0 : index
      %114 = vector.load %arg4[%c0_99, %c0_100, %c0_101, %c0_102] : memref<1x1x16x4xf32, #tpu.memory_space<vmem>>, vector<1x1x16x4xf32>
      %115 = vector.shape_cast %114 : vector<1x1x16x4xf32> to vector<1x16x4xf32>
      %116 = vector.shape_cast %115 : vector<1x16x4xf32> to vector<16x4xf32>
      %117 = tpu.iota {dimensions = array<i32: 0>} : vector<16x1xi32>
      %c16_i32_103 = arith.constant 16 : i32
      %c0_i32_104 = arith.constant 0 : i32
      %118 = arith.cmpi eq, %c16_i32_103, %c0_i32_104 : i32
      %c1_i32_105 = arith.constant 1 : i32
      %119 = arith.select %118, %c1_i32_105, %c16_i32_103 : i32
      %120 = vector.broadcast %119 : i32 to vector<16x1xi32>
      %121 = arith.remsi %117, %120 : vector<16x1xi32>
      %c0_i32_106 = arith.constant 0 : i32
      %122 = vector.broadcast %c0_i32_106 : i32 to vector<16x1xi32>
      %123 = arith.cmpi ne, %121, %122 : vector<16x1xi32>
      %c0_i32_107 = arith.constant 0 : i32
      %124 = vector.broadcast %c0_i32_107 : i32 to vector<16x1xi32>
      %125 = arith.cmpi slt, %121, %124 : vector<16x1xi32>
      %c0_i32_108 = arith.constant 0 : i32
      %126 = arith.cmpi slt, %119, %c0_i32_108 : i32
      %127 = vector.broadcast %126 : i1 to vector<16x1xi1>
      %128 = vector.broadcast %127 : vector<16x1xi1> to vector<16x1xi1>
      %129 = arith.xori %125, %128 : vector<16x1xi1>
      %130 = arith.andi %129, %123 : vector<16x1xi1>
      %131 = vector.broadcast %119 : i32 to vector<16x1xi32>
      %132 = arith.addi %121, %131 : vector<16x1xi32>
      %133 = arith.select %130, %132, %121 : vector<16x1xi1>, vector<16x1xi32>
      %c1_i32_109 = arith.constant 1 : i32
      %134 = vector.broadcast %c1_i32_109 : i32 to vector<16x1xi32>
      %135 = arith.cmpi sge, %133, %134 : vector<16x1xi32>
      %c1_i32_110 = arith.constant 1 : i32
      %136 = tpu.dynamic_rotate %116 by %c1_i32_110 dim 0 : vector<16x4xf32>, i32 -> vector<16x4xf32>
      %cst_111 = arith.constant 0.000000e+00 : f32
      %137 = vector.shape_cast %135 : vector<16x1xi1> to vector<16x1xi1>
      %138 = vector.broadcast %137 : vector<16x1xi1> to vector<16x4xi1>
      %139 = vector.broadcast %cst_111 : f32 to vector<16x4xf32>
      %140 = arith.select %138, %136, %139 : vector<16x4xi1>, vector<16x4xf32>
      %c15_i32_112 = arith.constant 15 : i32
      %141 = vector.broadcast %c15_i32_112 : i32 to vector<16x1xi32>
      %142 = arith.cmpi slt, %133, %141 : vector<16x1xi32>
      %c15_i32_113 = arith.constant 15 : i32
      %143 = tpu.dynamic_rotate %116 by %c15_i32_113 dim 0 : vector<16x4xf32>, i32 -> vector<16x4xf32>
      %cst_114 = arith.constant 0.000000e+00 : f32
      %144 = vector.shape_cast %142 : vector<16x1xi1> to vector<16x1xi1>
      %145 = vector.broadcast %144 : vector<16x1xi1> to vector<16x4xi1>
      %146 = vector.broadcast %cst_114 : f32 to vector<16x4xf32>
      %147 = arith.select %145, %143, %146 : vector<16x4xi1>, vector<16x4xf32>
      %c112 = arith.constant 112 : index
      %c0_115 = arith.constant 0 : index
      %148 = vector.load %arg9[%c112, %c0_115] : memref<128x8xf32, #tpu.memory_space<vmem>>, vector<16x8xf32>
      %c2_116 = arith.constant 2 : index
      %c0_117 = arith.constant 0 : index
      %c0_118 = arith.constant 0 : index
      %c0_119 = arith.constant 0 : index
      %149 = vector.load %arg5[%c2_116, %c0_117, %c0_118, %c0_119] : memref<3x3x4x8xf32, #tpu.memory_space<vmem>>, vector<1x1x4x8xf32>
      %150 = vector.shape_cast %149 : vector<1x1x4x8xf32> to vector<4x8xf32>
      %cst_120 = arith.constant dense<0.000000e+00> : vector<16x8xf32>
      %151 = tpu.matmul %140, %150, %cst_120 {dimension_numbers = #tpu.dot_dimension_numbers<[1], [0], [0], [1], [0, 0, 1, 1], [], []>} : vector<16x4xf32>, vector<4x8xf32>, vector<16x8xf32> -> vector<16x8xf32>
      %152 = arith.addf %148, %151 : vector<16x8xf32>
      %c112_121 = arith.constant 112 : index
      %c0_122 = arith.constant 0 : index
      %153 = vector.load %arg9[%c112_121, %c0_122] : memref<128x8xf32, #tpu.memory_space<vmem>>, vector<16x8xf32>
      tpu.vector_store %arg9[%c112_121, %c0_122], %152 {strides = array<i32>} : memref<128x8xf32, #tpu.memory_space<vmem>>, vector<16x8xf32>,
      %c112_123 = arith.constant 112 : index
      %c0_124 = arith.constant 0 : index
      %154 = vector.load %arg9[%c112_123, %c0_124] : memref<128x8xf32, #tpu.memory_space<vmem>>, vector<16x8xf32>
      %c2_125 = arith.constant 2 : index
      %c1_126 = arith.constant 1 : index
      %c0_127 = arith.constant 0 : index
      %c0_128 = arith.constant 0 : index
      %155 = vector.load %arg5[%c2_125, %c1_126, %c0_127, %c0_128] : memref<3x3x4x8xf32, #tpu.memory_space<vmem>>, vector<1x1x4x8xf32>
      %156 = vector.shape_cast %155 : vector<1x1x4x8xf32> to vector<4x8xf32>
      %cst_129 = arith.constant dense<0.000000e+00> : vector<16x8xf32>
      %157 = tpu.matmul %116, %156, %cst_129 {dimension_numbers = #tpu.dot_dimension_numbers<[1], [0], [0], [1], [0, 0, 1, 1], [], []>} : vector<16x4xf32>, vector<4x8xf32>, vector<16x8xf32> -> vector<16x8xf32>
      %158 = arith.addf %154, %157 : vector<16x8xf32>
      %c112_130 = arith.constant 112 : index
      %c0_131 = arith.constant 0 : index
      %159 = vector.load %arg9[%c112_130, %c0_131] : memref<128x8xf32, #tpu.memory_space<vmem>>, vector<16x8xf32>
      tpu.vector_store %arg9[%c112_130, %c0_131], %158 {strides = array<i32>} : memref<128x8xf32, #tpu.memory_space<vmem>>, vector<16x8xf32>,
      %c112_132 = arith.constant 112 : index
      %c0_133 = arith.constant 0 : index
      %160 = vector.load %arg9[%c112_132, %c0_133] : memref<128x8xf32, #tpu.memory_space<vmem>>, vector<16x8xf32>
      %c2_134 = arith.constant 2 : index
      %c2_135 = arith.constant 2 : index
      %c0_136 = arith.constant 0 : index
      %c0_137 = arith.constant 0 : index
      %161 = vector.load %arg5[%c2_134, %c2_135, %c0_136, %c0_137] : memref<3x3x4x8xf32, #tpu.memory_space<vmem>>, vector<1x1x4x8xf32>
      %162 = vector.shape_cast %161 : vector<1x1x4x8xf32> to vector<4x8xf32>
      %cst_138 = arith.constant dense<0.000000e+00> : vector<16x8xf32>
      %163 = tpu.matmul %147, %162, %cst_138 {dimension_numbers = #tpu.dot_dimension_numbers<[1], [0], [0], [1], [0, 0, 1, 1], [], []>} : vector<16x4xf32>, vector<4x8xf32>, vector<16x8xf32> -> vector<16x8xf32>
      %164 = arith.addf %160, %163 : vector<16x8xf32>
      %c112_139 = arith.constant 112 : index
      %c0_140 = arith.constant 0 : index
      %165 = vector.load %arg9[%c112_139, %c0_140] : memref<128x8xf32, #tpu.memory_space<vmem>>, vector<16x8xf32>
      tpu.vector_store %arg9[%c112_139, %c0_140], %164 {strides = array<i32>} : memref<128x8xf32, #tpu.memory_space<vmem>>, vector<16x8xf32>,
    } else {
    }
    %c0_89 = arith.constant 0 : index
    %c0_90 = arith.constant 0 : index
    %98 = vector.load %arg9[%c0_89, %c0_90] : memref<128x8xf32, #tpu.memory_space<vmem>>, vector<128x8xf32>
    %c0_91 = arith.constant 0 : index
    %c0_92 = arith.constant 0 : index
    %99 = vector.load %arg6[%c0_91, %c0_92] : memref<1x8xf32, #tpu.memory_space<vmem>>, vector<1x8xf32>
    %100 = vector.shape_cast %99 : vector<1x8xf32> to vector<8xf32>
    %101 = vector.shape_cast %100 : vector<8xf32> to vector<1x8xf32>
    %102 = vector.broadcast %101 : vector<1x8xf32> to vector<128x8xf32>
    %103 = arith.mulf %98, %102 : vector<128x8xf32>
    %c0_93 = arith.constant 0 : index
    %c0_94 = arith.constant 0 : index
    %104 = vector.load %arg7[%c0_93, %c0_94] : memref<1x8xf32, #tpu.memory_space<vmem>>, vector<1x8xf32>
    %105 = vector.shape_cast %104 : vector<1x8xf32> to vector<8xf32>
    %106 = vector.shape_cast %105 : vector<8xf32> to vector<1x8xf32>
    %107 = vector.broadcast %106 : vector<1x8xf32> to vector<128x8xf32>
    %108 = arith.addf %103, %107 : vector<128x8xf32>
    %cst_95 = arith.constant 0.000000e+00 : f32
    %109 = vector.broadcast %cst_95 : f32 to vector<128x8xf32>
    %110 = arith.maximumf %108, %109 : vector<128x8xf32>
    %c0_96 = arith.constant 0 : index
    %c0_97 = arith.constant 0 : index
    %c0_98 = arith.constant 0 : index
    %111 = vector.load %arg8[%c0_96, %c0_97, %c0_98] : memref<1x128x8xf32, #tpu.memory_space<vmem>>, vector<1x128x8xf32>
    %112 = vector.shape_cast %111 : vector<1x128x8xf32> to vector<128x8xf32>
    %113 = vector.shape_cast %110 : vector<128x8xf32> to vector<1x128x8xf32>
    tpu.vector_store %arg8[%c0_96, %c0_97, %c0_98], %113 {strides = array<i32>} : memref<1x128x8xf32, #tpu.memory_space<vmem>>, vector<1x128x8xf32>,
    return
  }
  func.func @transform_0(%arg0: i32, %arg1: i32) -> (i32, i32, i32, i32) {
    %c0_i32 = arith.constant 0 : i32
    %c0_i32_0 = arith.constant 0 : i32
    %c0_i32_1 = arith.constant 0 : i32
    return %arg0, %arg1, %c0_i32, %c0_i32_0 : i32, i32, i32, i32
  }
  func.func @transform_1(%arg0: i32, %arg1: i32) -> (i32, i32, i32, i32) {
    %c8_i32 = arith.constant 8 : i32
    %0 = arith.muli %arg1, %c8_i32 : i32
    %c1_i32 = arith.constant 1 : i32
    %1 = arith.subi %0, %c1_i32 : i32
    %c0_i32 = arith.constant 0 : i32
    %2 = arith.maxsi %1, %c0_i32 : i32
    %c0_i32_0 = arith.constant 0 : i32
    %c0_i32_1 = arith.constant 0 : i32
    %c0_i32_2 = arith.constant 0 : i32
    return %arg0, %2, %c0_i32_0, %c0_i32_1 : i32, i32, i32, i32
  }
  func.func @transform_2(%arg0: i32, %arg1: i32) -> (i32, i32, i32, i32) {
    %c1_i32 = arith.constant 1 : i32
    %0 = arith.addi %arg1, %c1_i32 : i32
    %c8_i32 = arith.constant 8 : i32
    %1 = arith.muli %0, %c8_i32 : i32
    %c15_i32 = arith.constant 15 : i32
    %2 = arith.minsi %1, %c15_i32 : i32
    %c0_i32 = arith.constant 0 : i32
    %c0_i32_0 = arith.constant 0 : i32
    %c0_i32_1 = arith.constant 0 : i32
    return %arg0, %2, %c0_i32, %c0_i32_0 : i32, i32, i32, i32
  }
  func.func @transform_3(%arg0: i32, %arg1: i32) -> (i32, i32, i32, i32) {
    %c0_i32 = arith.constant 0 : i32
    %c0_i32_0 = arith.constant 0 : i32
    %c0_i32_1 = arith.constant 0 : i32
    %c0_i32_2 = arith.constant 0 : i32
    %c0_i32_3 = arith.constant 0 : i32
    return %c0_i32, %c0_i32_0, %c0_i32_1, %c0_i32_2 : i32, i32, i32, i32
  }
  func.func @transform_4(%arg0: i32, %arg1: i32) -> (i32, i32) {
    %c0_i32 = arith.constant 0 : i32
    %c0_i32_0 = arith.constant 0 : i32
    %c0_i32_1 = arith.constant 0 : i32
    return %c0_i32, %c0_i32_0 : i32, i32
  }
  func.func @transform_5(%arg0: i32, %arg1: i32) -> (i32, i32) {
    %c0_i32 = arith.constant 0 : i32
    %c0_i32_0 = arith.constant 0 : i32
    %c0_i32_1 = arith.constant 0 : i32
    return %c0_i32, %c0_i32_0 : i32, i32
  }
  func.func @transform_6(%arg0: i32, %arg1: i32) -> (i32, i32, i32) {
    %c0_i32 = arith.constant 0 : i32
    %c0_i32_0 = arith.constant 0 : i32
    return %arg0, %arg1, %c0_i32 : i32, i32, i32
  }
}

</mosaic_0001>

<bundles_post_ra>
// kernel: tpu_custom_call.1
= control target key start
LH: loop header
LB: loop body
LE: loop exit
PB: predicated region body
PF: predicated region fallthrough
CT: control target
= control target key end

     0   :  { %s2777_s21 = smov 0   ;;  %s2779_s22 = smov 0   ;;  %s3817_s0 = inlined_call_operand.vmem [shape: f32[2,16,16,4], index: 0, kind: input, shape index: {}]   ;;  %s3818_s1 = inlined_call_operand.vmem [shape: f32[2,16,16,4], index: 1, kind: input, shape index: {}]   ;;  %s3819_s2 = inlined_call_operand.vmem [shape: f32[2,16,16,4], index: 2, kind: input, shape index: {}]   ;;  %s3820_s3 = inlined_call_operand.vmem [shape: f32[3,3,4,8], index: 3, kind: input, shape index: {}]   ;;  %s3821_s4 = inlined_call_operand.vmem [shape: f32[1,8], index: 4, kind: input, shape index: {}]   ;;  %s3822_s5 = inlined_call_operand.vmem [shape: f32[1,8], index: 5, kind: input, shape index: {}]   ;;  %s3823_s6 = inlined_call_operand.vmem [shape: f32[2,256,8], index: 6, kind: output, shape index: {}]  }
   0x1   :  { %s2781_s23 = smov 0   ;;  %s2783_s24 = smov 0  }
   0x2   :  { %s2785_s25 = smov 0  }
   0x3 LB: > { %s25_s26 = sadd.s32 1, %s2732_s23  ;;  %s28_s27 = sadd.s32 1, %s2736_s24  ;;  %s2740_s25 = sphi %s2785_s25, %s16_s25   ;;  %s2736_s24 = sphi %s2783_s24, %s3902_s24   ;;  %s2732_s23 = sphi %s2781_s23, %s3901_s23   ;;  %s2728_s22 = sphi %s2779_s22, %s3900_s22   ;;  %s2724_s21 = sphi %s2777_s21, %s3899_s21  }
   0x4   : > { %p26_p0 = scmp.ge.s32.totalorder %s25_s26, 2  ;;  %p2444_p1 = scmp.ge.s32.totalorder %s2740_s25, 1 }
   0x5   : > { %p298_p2 = scmp.lt.s32.totalorder %s2740_s25, 5 }
   0x6   : > { %s3904_s26 = smov (%p26_p0, %s25_s26), 0  ;;  %s3906_s27 = smov (!%p26_p0, %s28_s27), %s2736_s24 }
   0x7   : > { %p299_p3 = pnand %p2444_p1, %p298_p2  ;;  %p30_p4 = scmp.ge.s32.totalorder %s3906_s27, 2 }
   0x9   : > { %s3908_s27 = smov (%p30_p4, %s3906_s27), 0  ;;  %302 = sbr.rel (%p299_p3) target bundleno = 943 (0x3af), region = 44 }
   0xe   : > { %v2469_v0 = vld [vmem:[%s3820_s3 + $0x10] sm:$0xf]  ;;  %vm888_vm0 = vcmask 1043456   ;;  %s2813_s30 = sshll.u32 %s2724_s21, 3  ;;  %p364_p5 = scmp.lt.s32.totalorder %s2728_s22, 1  ;;  %v434_v3 = vlaneseq  ;;  %vm839_vm1 = vcmask 31744  }
   0xf   : > { %2653 = vmatpush.msk.msra.mxu1 %vm888_vm0, %v2469_v0  ;;  %p366_p6 = scmp.lt.s32.totalorder %s2813_s30, 15  ;;  %s2818_s7 = sadd.s32 4294967295, %s2813_s30  ;;  %v2487_v1 = vld [vmem:[%s3820_s3 + $0xc] sm:$0xf]  ;;  %v2505_v2 = vld [vmem:[%s3820_s3 + $0x14] sm:$0xf]  ;;  %2470 = vmatpush.msk.msra.mxu0 %vm888_vm0, %v2469_v0 }
  0x10   : > { %s3910_s22 = smov (!%p364_p5, %s2728_s22), 1  ;;  %2506 = vmatpush.msk.msra.mxu2 %vm888_vm0, %v2505_v2  ;;  %v1320_v4 = vld [vmem:[%s3820_s3] sm:$0xf]  ;;  %v2538_v5 = vld [vmem:[%s3820_s3 + $0x4] sm:$0xf]  ;;  %p376_p7 = scmp.gt.s32.totalorder %s2818_s7, 0 }
  0x11   : > { %2488 = vmatpush.msk.msrb.mxu1 %vm888_vm0, %v2487_v1  ;;  %s367_s16 = scalar_select %p366_p6, %s2813_s30, 15  ;;  %2654 = vmatpush.msk.msra.mxu3 %vm888_vm0, %v1320_v4  ;;  %v2843_v6 = vshrl.u32 %v434_v3, 7  ;;  %v2554_v31 = vld [vmem:[%s3820_s3 + $0x8] sm:$0xf] }
  0x12   : > { %2523 = vmatpush.msk.msrb.mxu2 %vm888_vm0, %v1320_v4  ;;  %s2838_s17 = sshll.u32 %s3910_s22, 5  ;;  %p2451_p8 = scmp.lt.s32.totalorder %s2818_s7, 15  ;;  %2555 = vmatpush.msk.msrb.mxu0 %vm888_vm0, %v2554_v31 }
  0x13   : > { %2539 = vmatpush.msk.msrb.mxu3 %vm888_vm0, %v2538_v5  ;;  %s2446_s18 = sshll.u32 %s367_s16, 1  ;;  %s2652_s20 = sadd.s32 8, %s2813_s30  ;;  %v436_v7 = vadd.s32 8, %v2843_v6  ;;  %vm772_vm2 = vcmp.lt.s32.totalorder %v2843_v6, 7  ;;  %v441_v14 = vadd.s32 48, %v2843_v6  ;;  %vm675_vm3 = vcmp.lt.s32.totalorder %v2843_v6, 1 }
  0x14   : > { %s370_s19 = sadd.s32 %s2838_s17, %s2446_s18  ;;  %p2847_p9 = scmp.lt.s32.totalorder %s2652_s20, 15  ;;  %v438_v37 = vadd.s32 24, %v2843_v6  ;;  %v443_v40 = vadd.s32 64, %v2843_v6  ;;  %v440_v54 = vadd.s32 40, %v2843_v6  ;;  %v445_v57 = vadd.s32 80, %v2843_v6 }
  0x15   : > { %s2448_s28 = sshll.u32 %s370_s19, 3  ;;  %s2466_s30 = sshll.u32 %s2724_s21, 4  ;;  %v462_v15 = vand.u32 15, %v436_v7  ;;  %v497_v23 = vand.u32 15, %v441_v14  ;;  %v442_v7 = vadd.s32 56, %v2843_v6  ;;  %v455_v14 = vand.u32 15, %v2843_v6 }
  0x16   : > { %s2855_s9 = scalar_lea.vmem %s3817_s0, %s2448_s28  ;;  %s3912_s20 = smov (!%p2847_p9, %s2652_s20), 15  ;;  %v476_v41 = vand.u32 15, %v438_v37  ;;  %v511_v45 = vand.u32 15, %v443_v40  ;;  %v490_v58 = vand.u32 15, %v440_v54  ;;  %v525_v61 = vand.u32 15, %v445_v57 }
  0x17   : > { %s377_s10 = scalar_select %p376_p7, %s2818_s7, 0  ;;  %v2860_v8 = vld [vmem:[%s2855_s9 + $0x48] sm:$0xff]  ;;  %v2863_v9 = vld [vmem:[%s2855_s9] sm:$0xff]  ;;  %v2876_v13 = vld [vmem:[%s2855_s9 + $0x10] sm:$0xff]  ;;  %vm2918_vm4 = vcmp.lt.s32.totalorder %v462_v15, 15  ;;  %vm649_vm5 = vcmp.ge.s32.totalorder %v497_v23, 1 }
  0x18   : > { %3848 = vst [vmem:[#allocation3_spill] sm:$0xff] %v2860_v8  ;;  %v2866_v10 = vld [vmem:[%s2855_s9 + $0x8] sm:$0xff]  ;;  %2480 = vmatmul.msk.f32.vlgmr.msra.gmra.mxu1 %vm839_vm1, %v2860_v8  ;;  %v756_v11 = vrot.slane %v2863_v9, 1  ;;  %2471 = vmatmul.msk.f32.vlgmr.msra.gmra.mxu0 %vm839_vm1, %v2863_v9  ;;  %v758_v16 = vrot.slane %v2876_v13, 1  ;;  %v2885_v17 = vld [vmem:[%s2855_s9 + $0x20] sm:$0xff]  ;;  %s3916_s20 = smov (!%p2847_p9, %s3912_s20), 15 }
  0x19   : > { %v757_v12 = vrot.slane %v2866_v10, 1  ;;  %s3914_s10 = smov (!%p2451_p8, %s377_s10), 15  ;;  %v2896_v19 = vld [vmem:[%s2855_s9 + $0x28] sm:$0xff]  ;;  %v663_v20 = vrot.slane %v2885_v17, 7  ;;  %p2902_p10 = scmp.lt.s32.totalorder %s2466_s30, 31  ;;  %v2910_v22 = vld [vmem:[%s2855_s9 + $0x30] sm:$0xff] }
  0x1a   : > { %s2456_s7 = sshll.u32 %s3914_s10, 1  ;;  %v664_v21 = vrot.slane %v2896_v19, 7  ;;  %s2463_s13 = sshll.u32 %s3916_s20, 1  ;;  %v665_v24 = vrot.slane %v2910_v22, 7  ;;  %v2916_v25 = vld [vmem:[%s2855_s9 + $0x50] sm:$0xff]  ;;  %v2960_v32 = vld [vmem:[%s2855_s9 + $0x18] sm:$0xff] }
  0x1b   : > { %v2893_v18 = vsel %vm772_vm2, %v756_v11, %v757_v12  ;;  %s384_s12 = sadd.s32 %s2456_s7, %s2838_s17  ;;  %s401_s15 = sadd.s32 %s2463_s13, %s2838_s17  ;;  %3850 = vst [vmem:[#allocation4_spill] sm:$0xff] %v2916_v25  ;;  %v786_v27 = vsel %vm772_vm2, %v757_v12, %v758_v16  ;;  %v759_v34 = vrot.slane %v2960_v32, 1  ;;  %v2975_v35 = vld [vmem:[%s2855_s9 + $0x38] sm:$0xff]  ;;  %v760_v42 = vrot.slane %v2885_v17, 1  ;;  %v2995_v43 = vld [vmem:[%s2855_s9 + $0x40] sm:$0xff]  ;;  %v3025_v53 = vld [vmem:[%s2855_s9 + $0x68] sm:$0xff] }
  0x1c   : > { %2507 = vmatmul.msk.f32.vlgmr.msra.gmra.mxu2 %vm839_vm1, %v2893_v18  ;;  %s2458_s14 = sshll.u32 %s384_s12, 3  ;;  %v2928_v28 = vsel %vm675_vm3, %v663_v20, %v664_v21  ;;  %s2465_s20 = sshll.u32 %s401_s15, 3  ;;  %v2950_v29 = vsel %vm2918_vm4, %v786_v27, 0.0  ;;  %v685_v30 = vsel %vm675_vm3, %v664_v21, %v665_v24  ;;  %3853 = vst [vmem:[#allocation5_spill] sm:$0xff] %v2975_v35  ;;  %v2978_v36 = vld [vmem:[%s2855_s9 + $0x58] sm:$0xff]  ;;  %v666_v38 = vrot.slane %v2975_v35, 7 }
  0x1d   : > { %s2933_s19 = scalar_lea.vmem %s3818_s1, %s2458_s14  ;;  %2529 = vmatmul.msk.f32.vlgmr.msra.gmra.mxu3 %vm839_vm1, %v2928_v28  ;;  %s2940_s22 = scalar_lea.vmem %s3819_s2, %s2465_s20  ;;  %v2966_v33 = vsel %vm649_vm5, %v685_v30, 0.0  ;;  %3854 = vst [vmem:[#allocation6_spill] sm:$0xff] %v2978_v36  ;;  %v2988_v39 = vsel %vm772_vm2, %v758_v16, %v759_v34  ;;  %v667_v46 = vrot.slane %v2995_v43, 7  ;;  %v3005_v47 = vld [vmem:[%s2855_s9 + $0x60] sm:$0xff]  ;;  %vm743_vm6 = vcmp.lt.s32.totalorder %v476_v41, 15  ;;  %v3049_v63 = vld [vmem:[%s2855_s9 + $0x70] sm:$0xff] }
  0x1e   : > { %s3918_s30 = smov (!%p2902_p10, %s2466_s30), 31  ;;  %3855 = vst [vmem:[#allocation7_spill] sm:$0xff] %v2995_v43  ;;  %v3001_v44 = vsel %vm675_vm3, %v665_v24, %v666_v38  ;;  %v784_v48 = vsel %vm772_vm2, %v759_v34, %v760_v42  ;;  %vm651_vm7 = vcmp.ge.s32.totalorder %v511_v45, 1  ;;  %v761_v52 = vrot.slane %v2896_v19, 1  ;;  %v3069_v5 = vld [vmem:[%s2855_s9 + $0x78] sm:$0xff]  ;;  %p2570_p11 = scmp.le.s32.totalorder %s2724_s21, 0 }
  0x1f   : > { %s414_s7 = sadd.s32 %s2838_s17, %s3918_s30  ;;  %3856 = vst [vmem:[#allocation8_spill] sm:$0xff] %v3001_v44  ;;  %v3013_v49 = vsel %vm743_vm6, %v784_v48, 0.0  ;;  %v683_v50 = vsel %vm675_vm3, %v666_v38, %v667_v46  ;;  %v668_v55 = vrot.slane %v2860_v8, 7  ;;  %v762_v59 = vrot.slane %v2910_v22, 1 }
  0x20   : > { %2481 = vmatmul.msk.f32.gmra.mxu1 %vm839_vm1, %v2916_v25  ;;  %2472 = vmatmul.msk.f32.gmra.mxu0 %vm839_vm1, %v2866_v10  ;;  %s2468_s11 = sshll.u32 %s414_s7, 3  ;;  %3857 = vst [vmem:[#allocation9_spill] sm:$0xff] %v3005_v47  ;;  %v3021_v51 = vsel %vm651_vm7, %v683_v50, 0.0  ;;  %v3035_v56 = vsel %vm772_vm2, %v760_v42, %v761_v52  ;;  %v669_v62 = vrot.slane %v2916_v25, 7  ;;  %vm745_vm8 = vcmp.lt.s32.totalorder %v490_v58, 15 }
  0x21   : > { %s2971_s14 = scalar_lea.vmem %s3823_s6, %s2468_s11  ;;  %3858 = vst [vmem:[#allocation10_spill] sm:$0xff] %v3021_v51  ;;  %v3045_v60 = vsel %vm675_vm3, %v667_v46, %v668_v55  ;;  %v782_v0 = vsel %vm772_vm2, %v761_v52, %v762_v59  ;;  %vm653_vm9 = vcmp.ge.s32.totalorder %v525_v61, 1  ;;  %v763_v4 = vrot.slane %v2975_v35, 1 }
  0x22   : > { %3859 = vst [vmem:[#allocation11_spill] sm:$0xff] %v3045_v60  ;;  %v3057_v1 = vsel %vm745_vm8, %v782_v0, 0.0  ;;  %v681_v2 = vsel %vm675_vm3, %v668_v55, %v669_v62  ;;  %v674_v12 = vrot.slane %v3069_v5, 7  ;;  %v659_v15 = vrot.slane %v2863_v9, 7 }
  0x23   : > { %v3065_v3 = vsel %vm653_vm9, %v681_v2, 0.0  ;;  %3861 = vst [vmem:[#allocation13_spill] sm:$0xff] %v3069_v5  ;;  %v670_v16 = vrot.slane %v2978_v36, 7  ;;  %v3082_v21 = vsel %vm772_vm2, %v762_v59, %v763_v4  ;;  %v447_v23 = vadd.s32 96, %v2843_v6 }
  0x24   : > { %2508 = vmatmul.msk.f32.gmra.mxu2 %vm839_vm1, %v2950_v29  ;;  %3860 = vst [vmem:[#allocation12_spill] sm:$0xff] %v3065_v3  ;;  %v504_v24 = vand.u32 15, %v442_v7  ;;  %v764_v27 = vrot.slane %v2995_v43, 1  ;;  %vm3088_vm10 = vcmp.ge.s32.totalorder %v455_v14, 1  ;;  %v691_v31 = vsel %vm675_vm3, %v674_v12, %v659_v15 }
  0x25   : > { %2530 = vmatmul.msk.f32.gmra.mxu3 %vm839_vm1, %v2966_v33  ;;  %3862 = vst [vmem:[#allocation14_spill] sm:$0xff] %v3082_v21  ;;  %v3100_v34 = vsel %vm675_vm3, %v669_v62, %v670_v16  ;;  %v539_v37 = vand.u32 15, %v447_v23  ;;  %v671_v38 = vrot.slane %v3005_v47, 7  ;;  %v3105_v40 = vsel %vm3088_vm10, %v691_v31, 0.0 }
  0x26   : > { %3865 = vst [vmem:[#allocation15_spill] sm:$0xff] %v3100_v34  ;;  %vm747_vm11 = vcmp.lt.s32.totalorder %v504_v24, 15  ;;  %v780_v41 = vsel %vm772_vm2, %v763_v4, %v764_v27  ;;  %v660_v46 = vrot.slane %v2866_v10, 7  ;;  %v437_v48 = vadd.s32 16, %v2843_v6 }
  0x27   : > { %v3113_v42 = vsel %vm747_vm11, %v780_v41, 0.0  ;;  %vm655_vm12 = vcmp.ge.s32.totalorder %v539_v37, 1  ;;  %v679_v45 = vsel %vm675_vm3, %v670_v16, %v671_v38  ;;  %v765_v52 = vrot.slane %v2860_v8, 1 }
  0x28   : > { %2482 = vmatmul.msk.f32.gmra.mxu1 %vm839_vm1, %v2978_v36  ;;  %2473 = vmatmul.msk.f32.gmra.mxu0 %vm839_vm1, %v2876_v13  ;;  %3866 = vst [vmem:[#allocation16_spill] sm:$0xff] %v3113_v42  ;;  %v3123_v50 = vsel %vm655_vm12, %v679_v45, 0.0  ;;  %v3128_v54 = vsel %vm675_vm3, %v659_v15, %v660_v46  ;;  %v444_v55 = vadd.s32 72, %v2843_v6  ;;  %v469_v57 = vand.u32 15, %v437_v48 }
  0x29   : > { %3867 = vst [vmem:[#allocation17_spill] sm:$0xff] %v3123_v50  ;;  %v661_v58 = vrot.slane %v2876_v13, 7  ;;  %v672_v59 = vrot.slane %v3025_v53, 7  ;;  %v3139_v61 = vsel %vm772_vm2, %v764_v27, %v765_v52  ;;  %v766_v0 = vrot.slane %v2916_v25, 1 }
  0x2a   : > { %3868 = vst [vmem:[#allocation18_spill] sm:$0xff] %v3139_v61  ;;  %v518_v62 = vand.u32 15, %v444_v55  ;;  %vm645_vm13 = vcmp.ge.s32.totalorder %v469_v57, 1  ;;  %v662_v16 = vrot.slane %v2960_v32, 7  ;;  %v439_v23 = vadd.s32 32, %v2843_v6 }
  0x2b   : > { %v689_v2 = vsel %vm675_vm3, %v660_v46, %v661_v58  ;;  %v3152_v4 = vsel %vm675_vm3, %v671_v38, %v672_v59  ;;  %v778_v14 = vsel %vm772_vm2, %v765_v52, %v766_v0  ;;  %v767_v24 = vrot.slane %v2978_v36, 1 }
  0x2c   : > { %2509 = vmatmul.msk.f32.gmra.mxu2 %vm839_vm1, %v2988_v39  ;;  %v3154_v7 = vsel %vm645_vm13, %v689_v2, 0.0  ;;  %vm749_vm14 = vcmp.lt.s32.totalorder %v518_v62, 15  ;;  %v3173_v27 = vsel %vm675_vm3, %v661_v58, %v662_v16  ;;  %v446_v31 = vadd.s32 88, %v2843_v6 }
  0x2d   : > { %2531 = vmatmul.msk.f32.gmra.mxu3 %vm839_vm1, %v3001_v44  ;;  %v3162_v15 = vsel %vm749_vm14, %v778_v14, 0.0  ;;  %v483_v37 = vand.u32 15, %v439_v23  ;;  %v768_v41 = vrot.slane %v3005_v47, 1  ;;  %v687_v45 = vsel %vm675_vm3, %v662_v16, %v663_v20 }
  0x2e   : > { %3869 = vst [vmem:[#allocation19_spill] sm:$0xff] %v3162_v15  ;;  %v532_v38 = vand.u32 15, %v446_v31  ;;  %v769_v20 = vrot.slane %v3025_v53, 1  ;;  %v448_v52 = vadd.s32 104, %v2843_v6  ;;  %v770_v55 = vrot.slane %v3049_v63, 1 }
  0x2f   : > { %vm647_vm15 = vcmp.ge.s32.totalorder %v483_v37, 1  ;;  %v776_v48 = vsel %vm772_vm2, %v767_v24, %v768_v41  ;;  %v450_v2 = vadd.s32 120, %v2843_v6  ;;  %vm957_vm8 = vcmask 64512  }
  0x30   : > { %2483 = vmatmul.msk.f32.gmra.mxu1 %vm839_vm1, %v3005_v47  ;;  %2474 = vmatmul.msk.f32.gmra.mxu0 %vm839_vm1, %v2960_v32  ;;  %v3193_v46 = vsel %vm647_vm15, %v687_v45, 0.0  ;;  %vm751_vm5 = vcmp.lt.s32.totalorder %v532_v38, 15  ;;  %v546_v57 = vand.u32 15, %v448_v52  ;;  %v774_v58 = vsel %vm772_vm2, %v769_v20, %v770_v55 }
  0x31   : > { %v560_v16 = vand.u32 15, %v450_v2  ;;  %v673_v2 = vrot.slane %v3049_v63, 7 }
  0x32   : > { %vm753_vm6 = vcmp.lt.s32.totalorder %v546_v57, 15  ;;  %v449_v57 = vadd.s32 112, %v2843_v6 }
  0x33   : > { %v3228_v62 = vsel %vm753_vm6, %v774_v58, 0.0  ;;  %vm755_vm7 = vcmp.lt.s32.totalorder %v560_v16, 15 }
  0x34   : > { %2510 = vmatmul.msk.f32.gmra.mxu2 %vm839_vm1, %v3013_v49  ;;  %3873 = vst [vmem:[#allocation23_spill] sm:$0xff] %v3228_v62 }
  0x35   : > { %2532 = vmatmul.msk.f32.gmra.mxu3 %vm839_vm1, %v3021_v51 }
  0x38   : > { %2484 = vmatmul.msk.f32.gmra.mxu1 %vm839_vm1, %v3025_v53  ;;  %2475 = vmatmul.msk.f32.gmra.mxu0 %vm839_vm1, %v2885_v17 }
  0x3c   : > { %2511 = vmatmul.msk.f32.gmra.mxu2 %vm839_vm1, %v3035_v56 }
  0x3d   : > { %2533 = vmatmul.msk.f32.gmra.mxu3 %vm839_vm1, %v3045_v60 }
  0x40   : > { %2485 = vmatmul.msk.f32.gmra.mxu1 %vm839_vm1, %v3049_v63  ;;  %2476 = vmatmul.msk.f32.gmra.mxu0 %vm839_vm1, %v2896_v19 }
  0x44   : > { %2512 = vmatmul.msk.f32.gmra.mxu2 %vm839_vm1, %v3057_v1 }
  0x45   : > { %2534 = vmatmul.msk.f32.gmra.mxu3 %vm839_vm1, %v3065_v3 }
  0x48   : > { %2486 = vmatmul.msk.f32.gmra.mxu1 %vm839_vm1, %v3069_v5  ;;  %2477 = vmatmul.msk.f32.gmra.mxu0 %vm839_vm1, %v2910_v22 }
  0x4c   : > { %2513 = vmatmul.msk.f32.gmra.mxu2 %vm839_vm1, %v3082_v21 }
  0x4d   : > { %2535 = vmatmul.msk.f32.gmra.mxu3 %vm839_vm1, %v3100_v34 }
  0x50   : > { %2489 = vmatmul.msk.f32.vlgmr.msrb.gmra.mxu1 %vm839_vm1, %v3105_v40  ;;  %2478 = vmatmul.msk.f32.gmra.mxu0 %vm839_vm1, %v2975_v35 }
  0x54   : > { %2514 = vmatmul.msk.f32.gmra.mxu2 %vm839_vm1, %v3113_v42 }
  0x55   : > { %2536 = vmatmul.msk.f32.gmra.mxu3 %vm839_vm1, %v3123_v50 }
  0x58   : > { %2490 = vmatmul.msk.f32.gmra.mxu1 %vm839_vm1, %v3128_v54  ;;  %2479 = vmatmul.msk.f32.gmra.mxu0 %vm839_vm1, %v2995_v43 }
  0x5c   : > { %2515 = vmatmul.msk.f32.gmra.mxu2 %vm839_vm1, %v3139_v61 }
  0x5d   : > { %2537 = vmatmul.msk.f32.gmra.mxu3 %vm839_vm1, %v3152_v4 }
  0x60   : > { %2491 = vmatmul.msk.f32.gmra.mxu1 %vm839_vm1, %v3154_v7  ;;  %2556 = vmatmul.msk.f32.vlgmr.msrb.gmra.mxu0 %vm839_vm1, %v2893_v18  ;;  %v3182_v18 = vsel %vm772_vm2, %v766_v0, %v767_v24  ;;  %v771_v0 = vrot.slane %v3069_v5, 1 }
  0x61   : > { %3870 = vst [vmem:[#allocation20_spill] sm:$0xff] %v3182_v18 }
  0x62   : > { %v3242_v14 = vsel %vm772_vm2, %v770_v55, %v771_v0  ;;  %v788_v23 = vsel %vm772_vm2, %v771_v0, %v756_v11 }
  0x63   : > { %3874 = vst [vmem:[#allocation24_spill] sm:$0xff] %v3242_v14  ;;  %v3256_v24 = vsel %vm755_vm7, %v788_v23, 0.0  ;;  %v553_v23 = vand.u32 15, %v449_v57  ;;  %v3351_v57 = vsel %vm675_vm3, %v673_v2, %v674_v12 }
  0x64   : > { %2516 = vmatmul.msk.f32.gmra.mxu2 %vm839_vm1, %v3162_v15  ;;  %3875 = vst [vmem:[#allocation25_spill] sm:$0xff] %v3256_v24 }
  0x65   : > { %2540 = vmatmul.msk.f32.vlgmr.msrb.gmra.mxu3 %vm839_vm1, %v2863_v9  ;;  %vm657_vm9 = vcmp.ge.s32.totalorder %v553_v23, 1 }
  0x68   : > { %2492 = vmatmul.msk.f32.gmra.mxu1 %vm839_vm1, %v3173_v27  ;;  %2557 = vmatmul.msk.f32.gmra.mxu0 %vm839_vm1, %v2950_v29  ;;  %v3201_v29 = vsel %vm751_vm5, %v776_v48, 0.0 }
  0x69   : > { %3871 = vst [vmem:[#allocation21_spill] sm:$0xff] %v3201_v29 }
  0x6c   : > { %2517 = vmatmul.msk.f32.gmra.mxu2 %vm839_vm1, %v3182_v18 }
  0x6d   : > { %2541 = vmatmul.msk.f32.gmra.mxu3 %vm839_vm1, %v2866_v10  ;;  %v3215_v10 = vsel %vm772_vm2, %v768_v41, %v769_v20 }
  0x6e   : > { %3872 = vst [vmem:[#allocation22_spill] sm:$0xff] %v3215_v10 }
  0x70   : > { %2493 = vmatmul.msk.f32.gmra.mxu1 %vm839_vm1, %v3193_v46  ;;  %2558 = vmatmul.msk.f32.gmra.mxu0 %vm839_vm1, %v2988_v39 }
  0x74   : > { %2518 = vmatmul.msk.f32.gmra.mxu2 %vm839_vm1, %v3201_v29 }
  0x75   : > { %2542 = vmatmul.msk.f32.gmra.mxu3 %vm839_vm1, %v2876_v13 }
  0x78   : > { %2494 = vmatmul.msk.f32.gmra.mxu1 %vm839_vm1, %v2928_v28  ;;  %2559 = vmatmul.msk.f32.gmra.mxu0 %vm839_vm1, %v3013_v49 }
  0x7c   : > { %2519 = vmatmul.msk.f32.gmra.mxu2 %vm839_vm1, %v3215_v10 }
  0x7d   : > { %2543 = vmatmul.msk.f32.gmra.mxu3 %vm839_vm1, %v2960_v32 }
  0x80   : > { %2495 = vmatmul.msk.f32.gmra.mxu1 %vm839_vm1, %v2966_v33  ;;  %2560 = vmatmul.msk.f32.gmra.mxu0 %vm839_vm1, %v3035_v56 }
  0x84   : > { %2520 = vmatmul.msk.f32.gmra.mxu2 %vm839_vm1, %v3228_v62 }
  0x85   : > { %2544 = vmatmul.msk.f32.gmra.mxu3 %vm839_vm1, %v2885_v17 }
  0x88   : > { %2496 = vmatmul.msk.f32.gmra.mxu1 %vm839_vm1, %v3001_v44  ;;  %2561 = vmatmul.msk.f32.gmra.mxu0 %vm839_vm1, %v3057_v1 }
  0x8c   : > { %2521 = vmatmul.msk.f32.gmra.mxu2 %vm839_vm1, %v3242_v14 }
  0x8d   : > { %2545 = vmatmul.msk.f32.gmra.mxu3 %vm839_vm1, %v2896_v19 }
  0x90   : > { %2497 = vmatmul.msk.f32.gmra.mxu1 %vm839_vm1, %v3021_v51  ;;  %2562 = vmatmul.msk.f32.gmra.mxu0 %vm839_vm1, %v3082_v21 }
  0x94   : > { %2522 = vmatmul.msk.f32.gmra.mxu2 %vm839_vm1, %v3256_v24 }
  0x95   : > { %v936_v31 = vpop.f32.mrf.mxu1  ;;  %2546 = vmatmul.msk.f32.gmra.mxu3 %vm839_vm1, %v2910_v22  ;;  %v909_v9 = vpop.f32.mrf.mxu0 }
  0x96   : > { %967 = vst.msk [vmem:[#allocation2 + $0x48] sm:$0xff] %vm957_vm8, %v936_v31 }
  0x97   : > { %958 = vst.msk [vmem:[#allocation2] sm:$0xff] %vm957_vm8, %v909_v9  ;;  %v677_v9 = vsel %vm675_vm3, %v672_v59, %v673_v2 }
  0x98   : > { %2498 = vmatmul.msk.f32.gmra.mxu1 %vm839_vm1, %v3045_v60  ;;  %2563 = vmatmul.msk.f32.gmra.mxu0 %vm839_vm1, %v3113_v42 }
  0x9c   : > { %2524 = vmatmul.msk.f32.vlgmr.msrb.gmra.mxu2 %vm839_vm1, %v3105_v40 }
  0x9d   : > { %v939_v11 = vpop.f32.mrf.mxu1  ;;  %2547 = vmatmul.msk.f32.gmra.mxu3 %vm839_vm1, %v2975_v35  ;;  %v912_v40 = vpop.f32.mrf.mxu0 }
  0x9e   : > { %968 = vst.msk [vmem:[#allocation2 + $0x50] sm:$0xff] %vm957_vm8, %v939_v11  ;;  %v974_v12 = vld [vmem:[#allocation2] sm:$0xff] }
  0x9f   : > { %v3273_v37 = vpop.f32.mrf.mxu2  ;;  %959 = vst.msk [vmem:[#allocation2 + $0x8] sm:$0xff] %vm957_vm8, %v912_v40  ;;  %v3333_v40 = vsel %vm657_vm9, %v677_v9, 0.0 }
  0xa0   : > { %2499 = vmatmul.msk.f32.gmra.mxu1 %vm839_vm1, %v3065_v3  ;;  %2564 = vmatmul.msk.f32.gmra.mxu0 %vm839_vm1, %v3139_v61  ;;  %v3281_v38 = vpop.f32.mrf.mxu3 }
  0xa4   : > { %2525 = vmatmul.msk.f32.gmra.mxu2 %vm839_vm1, %v3128_v54 }
  0xa5   : > { %v942_v41 = vpop.f32.mrf.mxu1  ;;  %2548 = vmatmul.msk.f32.gmra.mxu3 %vm839_vm1, %v2995_v43  ;;  %v915_v54 = vpop.f32.mrf.mxu0 }
  0xa6   : > { %969 = vst.msk [vmem:[#allocation2 + $0x58] sm:$0xff] %vm957_vm8, %v942_v41 }
  0xa7   : > { %v3287_v45 = vpop.f32.mrf.mxu2  ;;  %960 = vst.msk [vmem:[#allocation2 + $0x10] sm:$0xff] %vm957_vm8, %v915_v54 }
  0xa8   : > { %2500 = vmatmul.msk.f32.gmra.mxu1 %vm839_vm1, %v3100_v34  ;;  %2565 = vmatmul.msk.f32.gmra.mxu0 %vm839_vm1, %v3162_v15  ;;  %v3295_v48 = vpop.f32.mrf.mxu3 }
  0xac   : > { %2526 = vmatmul.msk.f32.gmra.mxu2 %vm839_vm1, %v3154_v7 }
  0xad   : > { %v945_v20 = vpop.f32.mrf.mxu1  ;;  %2549 = vmatmul.msk.f32.gmra.mxu3 %vm839_vm1, %v2860_v8  ;;  %v918_v0 = vpop.f32.mrf.mxu0 }
  0xae   : > { %970 = vst.msk [vmem:[#allocation2 + $0x60] sm:$0xff] %vm957_vm8, %v945_v20 }
  0xaf   : > { %v3301_v52 = vpop.f32.mrf.mxu2  ;;  %961 = vst.msk [vmem:[#allocation2 + $0x18] sm:$0xff] %vm957_vm8, %v918_v0 }
  0xb0   : > { %2501 = vmatmul.msk.f32.gmra.mxu1 %vm839_vm1, %v3123_v50  ;;  %2566 = vmatmul.msk.f32.gmra.mxu0 %vm839_vm1, %v3182_v18  ;;  %v3309_v55 = vpop.f32.mrf.mxu3 }
  0xb4   : > { %2527 = vmatmul.msk.f32.gmra.mxu2 %vm839_vm1, %v3173_v27 }
  0xb5   : > { %v948_v58 = vpop.f32.mrf.mxu1  ;;  %2550 = vmatmul.msk.f32.gmra.mxu3 %vm839_vm1, %v2916_v25  ;;  %v921_v41 = vpop.f32.mrf.mxu0 }
  0xb6   : > { %971 = vst.msk [vmem:[#allocation2 + $0x68] sm:$0xff] %vm957_vm8, %v948_v58 }
  0xb7   : > { %v3316_v16 = vpop.f32.mrf.mxu2  ;;  %962 = vst.msk [vmem:[#allocation2 + $0x20] sm:$0xff] %vm957_vm8, %v921_v41 }
  0xb8   : > { %2502 = vmatmul.msk.f32.gmra.mxu1 %vm839_vm1, %v3152_v4  ;;  %2567 = vmatmul.msk.f32.gmra.mxu0 %vm839_vm1, %v3201_v29  ;;  %v3325_v31 = vpop.f32.mrf.mxu3 }
  0xbc   : > { %2528 = vmatmul.msk.f32.gmra.mxu2 %vm839_vm1, %v3193_v46 }
  0xbd   : > { %v951_v11 = vpop.f32.mrf.mxu1  ;;  %2551 = vmatmul.msk.f32.gmra.mxu3 %vm839_vm1, %v2978_v36  ;;  %v924_v58 = vpop.f32.mrf.mxu0 }
  0xbe   : > { %972 = vst.msk [vmem:[#allocation2 + $0x70] sm:$0xff] %vm957_vm8, %v951_v11 }
  0xbf   : > { %v3336_v54 = vpop.f32.mrf.mxu2  ;;  %963 = vst.msk [vmem:[#allocation2 + $0x28] sm:$0xff] %vm957_vm8, %v924_v58  ;;  %v975_v58 = vld [vmem:[#allocation2 + $0x8] sm:$0xff] }
  0xc0   : > { %2503 = vmatmul.msk.f32.gmra.mxu1 %vm839_vm1, %v3333_v40  ;;  %2568 = vmatmul.msk.f32.gmra.mxu0 %vm839_vm1, %v3215_v10  ;;  %v3345_v59 = vpop.f32.mrf.mxu3 }
  0xc5   : > { %v954_v20 = vpop.f32.mrf.mxu1  ;;  %2552 = vmatmul.msk.f32.gmra.mxu3 %vm839_vm1, %v3005_v47  ;;  %v927_v9 = vpop.f32.mrf.mxu0 }
  0xc6   : > { %973 = vst.msk [vmem:[#allocation2 + $0x78] sm:$0xff] %vm957_vm8, %v954_v20 }
  0xc7   : > { %v3354_v0 = vpop.f32.mrf.mxu2  ;;  %964 = vst.msk [vmem:[#allocation2 + $0x30] sm:$0xff] %vm957_vm8, %v927_v9  ;;  %v976_v9 = vld [vmem:[#allocation2 + $0x10] sm:$0xff] }
  0xc8   : > { %2504 = vmatmul.msk.f32.gmra.mxu1 %vm839_vm1, %v3351_v57  ;;  %2569 = vmatmul.msk.f32.gmra.mxu0 %vm839_vm1, %v3228_v62  ;;  %v3363_v23 = vpop.f32.mrf.mxu3 }
  0xcd   : > { %v1060_v2 = vpop.f32.mrf.mxu1  ;;  %2553 = vmatmul.msk.f32.gmra.mxu3 %vm839_vm1, %v3025_v53  ;;  %v930_v47 = vpop.f32.mrf.mxu0 }
  0xce   : > { %v1108_v11 = vadd.f32 %v1060_v2, %v974_v12  ;;  %965 = vst.msk [vmem:[#allocation2 + $0x38] sm:$0xff] %vm957_vm8, %v930_v47 }
  0xcf   : > { %v3365_v41 = vpop.f32.mrf.mxu2 }
  0xd0   : > { %1124 = vst.msk [vmem:[#allocation2] sm:$0xff] %vm957_vm8, %v1108_v11  ;;  %v3371_v20 = vpop.f32.mrf.mxu3 }
  0xd5   : > { %v1063_v10 = vpop.f32.mrf.mxu1  ;;  %v933_v34 = vpop.f32.mrf.mxu0 }
  0xd6   : > { %v1109_v50 = vadd.f32 %v1063_v10, %v975_v58  ;;  %966 = vst.msk [vmem:[#allocation2 + $0x40] sm:$0xff] %vm957_vm8, %v933_v34 }
  0xd7   : > { %v3373_v29 = vpop.f32.mrf.mxu2  ;;  %v1140_v12 = vld [vmem:[#allocation2] sm:$0xff] }
  0xd8   : > { %v1274_v2 = vadd.f32 %v3273_v37, %v1140_v12  ;;  %1125 = vst.msk [vmem:[#allocation2 + $0x8] sm:$0xff] %vm957_vm8, %v1109_v50  ;;  %v3378_v36 = vpop.f32.mrf.mxu3  ;;  %v977_v50 = vld [vmem:[#allocation2 + $0x18] sm:$0xff] }
  0xda   : > { %1290 = vst.msk [vmem:[#allocation2] sm:$0xff] %vm957_vm8, %v1274_v2 }
  0xdd   : > { %v1066_v11 = vpop.f32.mrf.mxu1 }
  0xde   : > { %v1110_v18 = vadd.f32 %v1066_v11, %v976_v9  ;;  %v3395_v11 = vpop.f32.mrf.mxu0 }
  0xdf   : > { %v3381_v25 = vpop.f32.mrf.mxu2  ;;  %v1141_v10 = vld [vmem:[#allocation2 + $0x8] sm:$0xff] }
  0xe0   : > { %v1275_v47 = vadd.f32 %v3287_v45, %v1141_v10  ;;  %1126 = vst.msk [vmem:[#allocation2 + $0x10] sm:$0xff] %vm957_vm8, %v1110_v18  ;;  %v3386_v37 = vpop.f32.mrf.mxu3  ;;  %v978_v18 = vld [vmem:[#allocation2 + $0x20] sm:$0xff] }
  0xe2   : > { %1291 = vst.msk [vmem:[#allocation2 + $0x8] sm:$0xff] %vm957_vm8, %v1275_v47 }
  0xe5   : > { %v1069_v58 = vpop.f32.mrf.mxu1 }
  0xe6   : > { %v1111_v12 = vadd.f32 %v1069_v58, %v977_v50 }
  0xe7   : > { %v3389_v2 = vpop.f32.mrf.mxu2  ;;  %v1142_v24 = vld [vmem:[#allocation2 + $0x10] sm:$0xff] }
  0xe8   : > { %1127 = vst.msk [vmem:[#allocation2 + $0x18] sm:$0xff] %vm957_vm8, %v1111_v12  ;;  %v1276_v9 = vadd.f32 %v3301_v52, %v1142_v24  ;;  %v3393_v34 = vpop.f32.mrf.mxu3  ;;  %v3405_v24 = vpop.f32.mrf.mxu0  ;;  %v979_v52 = vld [vmem:[#allocation2 + $0x28] sm:$0xff] }
  0xea   : > { %1292 = vst.msk [vmem:[#allocation2 + $0x10] sm:$0xff] %vm957_vm8, %v1276_v9 }
  0xed   : > { %v1072_v45 = vpop.f32.mrf.mxu1 }
  0xee   : > { %v1112_v10 = vadd.f32 %v1072_v45, %v978_v18 }
  0xef   : > { %v3398_v47 = vpop.f32.mrf.mxu2  ;;  %v1143_v3 = vld [vmem:[#allocation2 + $0x18] sm:$0xff] }
  0xf0   : > { %1128 = vst.msk [vmem:[#allocation2 + $0x20] sm:$0xff] %vm957_vm8, %v1112_v10  ;;  %v1277_v50 = vadd.f32 %v3316_v16, %v1143_v3  ;;  %v3402_v58 = vpop.f32.mrf.mxu3  ;;  %v980_v3 = vld [vmem:[#allocation2 + $0x30] sm:$0xff]  ;;  %v3414_v10 = vpop.f32.mrf.mxu0 }
  0xf2   : > { %1293 = vst.msk [vmem:[#allocation2 + $0x18] sm:$0xff] %vm957_vm8, %v1277_v50 }
  0xf5   : > { %v1075_v12 = vpop.f32.mrf.mxu1 }
  0xf6   : > { %v1113_v15 = vadd.f32 %v1075_v12, %v979_v52 }
  0xf7   : > { %v3407_v9 = vpop.f32.mrf.mxu2  ;;  %v1144_v8 = vld [vmem:[#allocation2 + $0x20] sm:$0xff] }
  0xf8   : > { %1129 = vst.msk [vmem:[#allocation2 + $0x28] sm:$0xff] %vm957_vm8, %v1113_v15  ;;  %v1278_v18 = vadd.f32 %v3336_v54, %v1144_v8  ;;  %v3411_v45 = vpop.f32.mrf.mxu3  ;;  %v981_v8 = vld [vmem:[#allocation2 + $0x38] sm:$0xff]  ;;  %v3425_v61 = vpop.f32.mrf.mxu0 }
  0xfa   : > { %1294 = vst.msk [vmem:[#allocation2 + $0x20] sm:$0xff] %vm957_vm8, %v1278_v18 }
  0xfd   : > { %v1078_v16 = vpop.f32.mrf.mxu1 }
  0xfe   : > { %v1114_v50 = vadd.f32 %v1078_v16, %v980_v3 }
  0xff   : > { %v3416_v14 = vpop.f32.mrf.mxu2  ;;  %v1145_v60 = vld [vmem:[#allocation2 + $0x28] sm:$0xff] }
 0x100   : > { %1130 = vst.msk [vmem:[#allocation2 + $0x30] sm:$0xff] %vm957_vm8, %v1114_v50  ;;  %v1279_v52 = vadd.f32 %v3354_v0, %v1145_v60  ;;  %v3420_v12 = vpop.f32.mrf.mxu3  ;;  %v982_v60 = vld [vmem:[#allocation2 + $0x40] sm:$0xff] }
 0x102   : > { %1295 = vst.msk [vmem:[#allocation2 + $0x28] sm:$0xff] %vm957_vm8, %v1279_v52 }
 0x105   : > { %v1081_v15 = vpop.f32.mrf.mxu1 }
 0x106   : > { %v1115_v54 = vadd.f32 %v1081_v15, %v981_v8  ;;  %v3436_v15 = vpop.f32.mrf.mxu0 }
 0x107   : > { %v3423_v18 = vpop.f32.mrf.mxu2  ;;  %v1146_v43 = vld [vmem:[#allocation2 + $0x30] sm:$0xff] }
 0x108   : > { %1131 = vst.msk [vmem:[#allocation2 + $0x38] sm:$0xff] %vm957_vm8, %v1115_v54  ;;  %v1280_v3 = vadd.f32 %v3365_v41, %v1146_v43  ;;  %v3429_v16 = vpop.f32.mrf.mxu3  ;;  %v983_v43 = vld [vmem:[#allocation2 + $0x48] sm:$0xff] }
 0x10a   : > { %1296 = vst.msk [vmem:[#allocation2 + $0x30] sm:$0xff] %vm957_vm8, %v1280_v3 }
 0x10d   : > { %v1084_v0 = vpop.f32.mrf.mxu1 }
 0x10e   : > { %v1116_v50 = vadd.f32 %v1084_v0, %v982_v60 }
 0x10f   : > { %v3432_v52 = vpop.f32.mrf.mxu2  ;;  %v1147_v62 = vld [vmem:[#allocation2 + $0x38] sm:$0xff] }
 0x110   : > { %v1281_v8 = vadd.f32 %v3373_v29, %v1147_v62  ;;  %1132 = vst.msk [vmem:[#allocation2 + $0x40] sm:$0xff] %vm957_vm8, %v1116_v50  ;;  %v1462_v54 = vpop.f32.mrf.mxu3  ;;  %v1568_v62 = vpop.f32.mrf.mxu0 }
 0x112   : > { %1297 = vst.msk [vmem:[#allocation2 + $0x38] sm:$0xff] %vm957_vm8, %v1281_v8  ;;  %v984_v8 = vld [vmem:[#allocation2 + $0x50] sm:$0xff] }
 0x115   : > { %v1087_v41 = vpop.f32.mrf.mxu1 }
 0x116   : > { %v1117_v51 = vadd.f32 %v1087_v41, %v983_v43  ;;  %v1306_v43 = vld [vmem:[#allocation2 + $0x10] sm:$0xff] }
 0x117   : > { %v3439_v42 = vpop.f32.mrf.mxu2  ;;  %v1148_v3 = vld [vmem:[#allocation2 + $0x40] sm:$0xff] }
 0x118   : > { %v1282_v60 = vadd.f32 %v3381_v25, %v1148_v3  ;;  %1133 = vst.msk [vmem:[#allocation2 + $0x48] sm:$0xff] %vm957_vm8, %v1117_v51  ;;  %v1465_v50 = vpop.f32.mrf.mxu3 }
 0x119   : > { %v1311_v0 = vld [vmem:[#allocation2 + $0x38] sm:$0xff] }
 0x11a   : > { %1298 = vst.msk [vmem:[#allocation2 + $0x40] sm:$0xff] %vm957_vm8, %v1282_v60  ;;  %v1388_v29 = vadd.f32 %v3281_v38, %v1311_v0 }
 0x11c   : > { %1402 = vst.msk [vmem:[#allocation2 + $0x38] sm:$0xff] %vm957_vm8, %v1388_v29  ;;  %v1571_v29 = vpop.f32.mrf.mxu0 }
 0x11d   : > { %v1090_v35 = vpop.f32.mrf.mxu1 }
 0x11e   : > { %v1118_v5 = vadd.f32 %v1090_v35, %v984_v8  ;;  %v985_v35 = vld [vmem:[#allocation2 + $0x58] sm:$0xff] }
 0x11f   : > { %v1341_v41 = vpop.f32.mrf.mxu2  ;;  %v1149_v44 = vld [vmem:[#allocation2 + $0x48] sm:$0xff] }
 0x120   : > { %v1383_v21 = vadd.f32 %v1341_v41, %v1306_v43  ;;  %v1283_v25 = vadd.f32 %v3389_v2, %v1149_v44  ;;  %1134 = vst.msk [vmem:[#allocation2 + $0x50] sm:$0xff] %vm957_vm8, %v1118_v5  ;;  %v1307_v44 = vld [vmem:[#allocation2 + $0x18] sm:$0xff]  ;;  %v1468_v5 = vpop.f32.mrf.mxu3 }
 0x121   : > { %v1312_v51 = vld [vmem:[#allocation2 + $0x40] sm:$0xff] }
 0x122   : > { %1397 = vst.msk [vmem:[#allocation2 + $0x10] sm:$0xff] %vm957_vm8, %v1383_v21  ;;  %v1389_v38 = vadd.f32 %v3295_v48, %v1312_v51 }
 0x123   : > { %1299 = vst.msk [vmem:[#allocation2 + $0x48] sm:$0xff] %vm957_vm8, %v1283_v25  ;;  %v1416_v3 = vld [vmem:[#allocation2 + $0x38] sm:$0xff] }
 0x124   : > { %v1494_v60 = vadd.f32 %v1462_v54, %v1416_v3  ;;  %1403 = vst.msk [vmem:[#allocation2 + $0x40] sm:$0xff] %vm957_vm8, %v1389_v38 }
 0x125   : > { %v1093_v0 = vpop.f32.mrf.mxu1 }
 0x126   : > { %1508 = vst.msk [vmem:[#allocation2 + $0x38] sm:$0xff] %vm957_vm8, %v1494_v60  ;;  %v1119_v8 = vadd.f32 %v1093_v0, %v985_v35  ;;  %v986_v60 = vld [vmem:[#allocation2 + $0x60] sm:$0xff] }
 0x127   : > { %v1344_v2 = vpop.f32.mrf.mxu2  ;;  %v1150_v43 = vld [vmem:[#allocation2 + $0x50] sm:$0xff] }
 0x128   : > { %v1384_v21 = vadd.f32 %v1344_v2, %v1307_v44  ;;  %v1284_v41 = vadd.f32 %v3398_v47, %v1150_v43  ;;  %1135 = vst.msk [vmem:[#allocation2 + $0x58] sm:$0xff] %vm957_vm8, %v1119_v8  ;;  %v1308_v2 = vld [vmem:[#allocation2 + $0x20] sm:$0xff] }
 0x129   : > { %v1411_v25 = vld [vmem:[#allocation2 + $0x10] sm:$0xff] }
 0x12a   : > { %v1489_v48 = vadd.f32 %v3393_v34, %v1411_v25  ;;  %1398 = vst.msk [vmem:[#allocation2 + $0x18] sm:$0xff] %vm957_vm8, %v1384_v21  ;;  %v1313_v54 = vld [vmem:[#allocation2 + $0x48] sm:$0xff] }
 0x12b   : > { %1300 = vst.msk [vmem:[#allocation2 + $0x50] sm:$0xff] %vm957_vm8, %v1284_v41  ;;  %v1390_v51 = vadd.f32 %v3309_v55, %v1313_v54  ;;  %v1417_v38 = vld [vmem:[#allocation2 + $0x40] sm:$0xff]  ;;  %v1471_v41 = vpop.f32.mrf.mxu3 }
 0x12c   : > { %1503 = vst.msk [vmem:[#allocation2 + $0x10] sm:$0xff] %vm957_vm8, %v1489_v48  ;;  %v1495_v3 = vadd.f32 %v1465_v50, %v1417_v38  ;;  %v1574_v50 = vpop.f32.mrf.mxu0 }
 0x12d   : > { %1404 = vst.msk [vmem:[#allocation2 + $0x48] sm:$0xff] %vm957_vm8, %v1390_v51  ;;  %v1096_v47 = vpop.f32.mrf.mxu1  ;;  %v1522_v35 = vld [vmem:[#allocation2 + $0x38] sm:$0xff] }
 0x12e   : > { %1509 = vst.msk [vmem:[#allocation2 + $0x40] sm:$0xff] %vm957_vm8, %v1495_v3  ;;  %v1120_v0 = vadd.f32 %v1096_v47, %v986_v60  ;;  %v1600_v34 = vadd.f32 %v1568_v62, %v1522_v35  ;;  %v987_v3 = vld [vmem:[#allocation2 + $0x68] sm:$0xff] }
 0x12f   : > { %v1347_v8 = vpop.f32.mrf.mxu2  ;;  %v1151_v44 = vld [vmem:[#allocation2 + $0x58] sm:$0xff] }
 0x130   : > { %v1285_v43 = vadd.f32 %v3407_v9, %v1151_v44  ;;  %1136 = vst.msk [vmem:[#allocation2 + $0x60] sm:$0xff] %vm957_vm8, %v1120_v0  ;;  %v1385_v55 = vadd.f32 %v1347_v8, %v1308_v2  ;;  %v1309_v0 = vld [vmem:[#allocation2 + $0x28] sm:$0xff] }
 0x131   : > { %v1412_v21 = vld [vmem:[#allocation2 + $0x18] sm:$0xff]  ;;  %1614 = vst.msk [vmem:[#allocation2 + $0x38] sm:$0xff] %vm957_vm8, %v1600_v34 }
 0x132   : > { %v1490_v25 = vadd.f32 %v3402_v58, %v1412_v21  ;;  %v1314_v48 = vld [vmem:[#allocation2 + $0x50] sm:$0xff]  ;;  %1301 = vst.msk [vmem:[#allocation2 + $0x58] sm:$0xff] %vm957_vm8, %v1285_v43 }
 0x133   : > { %v1517_v54 = vld [vmem:[#allocation2 + $0x10] sm:$0xff]  ;;  %v1391_v9 = vadd.f32 %v3325_v31, %v1314_v48  ;;  %1399 = vst.msk [vmem:[#allocation2 + $0x20] sm:$0xff] %vm957_vm8, %v1385_v55  ;;  %v1474_v43 = vpop.f32.mrf.mxu3 }
 0x134   : > { %v1595_v62 = vadd.f32 %v3395_v11, %v1517_v54  ;;  %1504 = vst.msk [vmem:[#allocation2 + $0x18] sm:$0xff] %vm957_vm8, %v1490_v25  ;;  %v1418_v51 = vld [vmem:[#allocation2 + $0x48] sm:$0xff] }
 0x135   : > { %v1496_v38 = vadd.f32 %v1468_v5, %v1418_v51  ;;  %v1099_v58 = vpop.f32.mrf.mxu1  ;;  %v1523_v60 = vld [vmem:[#allocation2 + $0x40] sm:$0xff]  ;;  %1405 = vst.msk [vmem:[#allocation2 + $0x50] sm:$0xff] %vm957_vm8, %v1391_v9 }
 0x136   : > { %1609 = vst.msk [vmem:[#allocation2 + $0x10] sm:$0xff] %vm957_vm8, %v1595_v62  ;;  %v1121_v47 = vadd.f32 %v1099_v58, %v987_v3  ;;  %v1601_v35 = vadd.f32 %v1571_v29, %v1523_v60  ;;  %v1577_v29 = vpop.f32.mrf.mxu0  ;;  %v1310_v3 = vld [vmem:[#allocation2 + $0x30] sm:$0xff] }
 0x137   : > { %1510 = vst.msk [vmem:[#allocation2 + $0x48] sm:$0xff] %vm957_vm8, %v1496_v38  ;;  %v1350_v34 = vpop.f32.mrf.mxu2  ;;  %v1152_v11 = vld [vmem:[#allocation2 + $0x60] sm:$0xff] }
 0x138   : > { %v1386_v8 = vadd.f32 %v1350_v34, %v1309_v0  ;;  %v1286_v31 = vadd.f32 %v3416_v14, %v1152_v11  ;;  %1137 = vst.msk [vmem:[#allocation2 + $0x68] sm:$0xff] %vm957_vm8, %v1121_v47  ;;  %v988_v14 = vld [vmem:[#allocation2 + $0x70] sm:$0xff] }
 0x139   : > { %1615 = vst.msk [vmem:[#allocation2 + $0x40] sm:$0xff] %vm957_vm8, %v1601_v35  ;;  %v1315_v5 = vld [vmem:[#allocation2 + $0x58] sm:$0xff] }
 0x13a   : > { %1302 = vst.msk [vmem:[#allocation2 + $0x60] sm:$0xff] %vm957_vm8, %v1286_v31  ;;  %v1392_v2 = vadd.f32 %v3345_v59, %v1315_v5  ;;  %v1413_v55 = vld [vmem:[#allocation2 + $0x20] sm:$0xff] }
 0x13b   : > { %v1518_v44 = vld [vmem:[#allocation2 + $0x18] sm:$0xff]  ;;  %1400 = vst.msk [vmem:[#allocation2 + $0x28] sm:$0xff] %vm957_vm8, %v1386_v8  ;;  %v1491_v25 = vadd.f32 %v3411_v45, %v1413_v55 }
 0x13c   : > { %v1596_v21 = vadd.f32 %v3405_v24, %v1518_v44  ;;  %1406 = vst.msk [vmem:[#allocation2 + $0x58] sm:$0xff] %vm957_vm8, %v1392_v2  ;;  %v1419_v62 = vld [vmem:[#allocation2 + $0x50] sm:$0xff]  ;;  %v989_v8 = vld [vmem:[#allocation2 + $0x78] sm:$0xff] }
 0x13d   : > { %v1102_v48 = vpop.f32.mrf.mxu1  ;;  %1505 = vst.msk [vmem:[#allocation2 + $0x20] sm:$0xff] %vm957_vm8, %v1491_v25  ;;  %v1497_v38 = vadd.f32 %v1471_v41, %v1419_v62 }
 0x13e   : > { %1610 = vst.msk [vmem:[#allocation2 + $0x18] sm:$0xff] %vm957_vm8, %v1596_v21  ;;  %v1524_v54 = vld [vmem:[#allocation2 + $0x48] sm:$0xff]  ;;  %v1122_v59 = vadd.f32 %v1102_v48, %v988_v14  ;;  %v1580_v34 = vpop.f32.mrf.mxu0 }
 0x13f   : > { %v1353_v51 = vpop.f32.mrf.mxu2  ;;  %v1153_v9 = vld [vmem:[#allocation2 + $0x68] sm:$0xff]  ;;  %v1602_v24 = vadd.f32 %v1574_v50, %v1524_v54  ;;  %1511 = vst.msk [vmem:[#allocation2 + $0x50] sm:$0xff] %vm957_vm8, %v1497_v38 }
 0x140   : > { %v1287_v58 = vadd.f32 %v3423_v18, %v1153_v9  ;;  %1138 = vst.msk [vmem:[#allocation2 + $0x70] sm:$0xff] %vm957_vm8, %v1122_v59  ;;  %v1387_v45 = vadd.f32 %v1353_v51, %v1310_v3  ;;  %v1477_v18 = vpop.f32.mrf.mxu3 }
 0x141   : > { %v1316_v60 = vld [vmem:[#allocation2 + $0x60] sm:$0xff]  ;;  %1616 = vst.msk [vmem:[#allocation2 + $0x48] sm:$0xff] %vm957_vm8, %v1602_v24 }
 0x142   : > { %1303 = vst.msk [vmem:[#allocation2 + $0x68] sm:$0xff] %vm957_vm8, %v1287_v58  ;;  %v1414_v47 = vld [vmem:[#allocation2 + $0x28] sm:$0xff]  ;;  %v1393_v41 = vadd.f32 %v3363_v23, %v1316_v60 }
 0x143   : > { %v1492_v35 = vadd.f32 %v3420_v12, %v1414_v47  ;;  %v1420_v0 = vld [vmem:[#allocation2 + $0x58] sm:$0xff]  ;;  %1401 = vst.msk [vmem:[#allocation2 + $0x30] sm:$0xff] %vm957_vm8, %v1387_v45 }
 0x144   : > { %v1498_v50 = vadd.f32 %v1474_v43, %v1420_v0  ;;  %v1519_v11 = vld [vmem:[#allocation2 + $0x20] sm:$0xff]  ;;  %1407 = vst.msk [vmem:[#allocation2 + $0x60] sm:$0xff] %vm957_vm8, %v1393_v41 }
 0x145   : > { %1506 = vst.msk [vmem:[#allocation2 + $0x28] sm:$0xff] %vm957_vm8, %v1492_v35  ;;  %v1105_v31 = vpop.f32.mrf.mxu1  ;;  %v1597_v5 = vadd.f32 %v3414_v10, %v1519_v11 }
 0x146   : > { %1512 = vst.msk [vmem:[#allocation2 + $0x58] sm:$0xff] %vm957_vm8, %v1498_v50  ;;  %v1123_v12 = vadd.f32 %v1105_v31, %v989_v8  ;;  %v1525_v2 = vld [vmem:[#allocation2 + $0x50] sm:$0xff]  ;;  %v1583_v59 = vpop.f32.mrf.mxu0 }
 0x147   : > { %v1154_v44 = vld [vmem:[#allocation2 + $0x70] sm:$0xff]  ;;  %1611 = vst.msk [vmem:[#allocation2 + $0x20] sm:$0xff] %vm957_vm8, %v1597_v5  ;;  %v1603_v43 = vadd.f32 %v1577_v29, %v1525_v2 }
 0x148   : > { %v1288_v23 = vadd.f32 %v3432_v52, %v1154_v44  ;;  %1139 = vst.msk [vmem:[#allocation2 + $0x78] sm:$0xff] %vm957_vm8, %v1123_v12  ;;  %v1480_v62 = vpop.f32.mrf.mxu3 }
 0x149   : > { %v1317_v21 = vld [vmem:[#allocation2 + $0x68] sm:$0xff]  ;;  %1617 = vst.msk [vmem:[#allocation2 + $0x50] sm:$0xff] %vm957_vm8, %v1603_v43 }
 0x14a   : > { %1304 = vst.msk [vmem:[#allocation2 + $0x70] sm:$0xff] %vm957_vm8, %v1288_v23  ;;  %v1394_v55 = vadd.f32 %v3371_v20, %v1317_v21  ;;  %v1415_v10 = vld [vmem:[#allocation2 + $0x30] sm:$0xff] }
 0x14b   : > { %v1493_v14 = vadd.f32 %v3429_v16, %v1415_v10  ;;  %v1421_v54 = vld [vmem:[#allocation2 + $0x60] sm:$0xff] }
 0x14c   : > { %v1520_v25 = vld [vmem:[#allocation2 + $0x28] sm:$0xff]  ;;  %1408 = vst.msk [vmem:[#allocation2 + $0x68] sm:$0xff] %vm957_vm8, %v1394_v55  ;;  %v1499_v20 = vadd.f32 %v1477_v18, %v1421_v54 }
 0x14d   : > { %v1598_v48 = vadd.f32 %v3425_v61, %v1520_v25  ;;  %v1526_v52 = vld [vmem:[#allocation2 + $0x58] sm:$0xff]  ;;  %1507 = vst.msk [vmem:[#allocation2 + $0x30] sm:$0xff] %vm957_vm8, %v1493_v14 }
 0x14e   : > { %v1604_v29 = vadd.f32 %v1580_v34, %v1526_v52  ;;  %1513 = vst.msk [vmem:[#allocation2 + $0x60] sm:$0xff] %vm957_vm8, %v1499_v20  ;;  %v1586_v60 = vpop.f32.mrf.mxu0 }
 0x14f   : > { %1612 = vst.msk [vmem:[#allocation2 + $0x28] sm:$0xff] %vm957_vm8, %v1598_v48  ;;  %v1155_v51 = vld [vmem:[#allocation2 + $0x78] sm:$0xff] }
 0x150   : > { %1618 = vst.msk [vmem:[#allocation2 + $0x58] sm:$0xff] %vm957_vm8, %v1604_v29  ;;  %v1289_v9 = vadd.f32 %v3439_v42, %v1155_v51  ;;  %v1483_v42 = vpop.f32.mrf.mxu3 }
 0x151   : > { %v1318_v16 = vld [vmem:[#allocation2 + $0x70] sm:$0xff] }
 0x152   : > { %v1395_v61 = vadd.f32 %v3378_v36, %v1318_v16  ;;  %1305 = vst.msk [vmem:[#allocation2 + $0x78] sm:$0xff] %vm957_vm8, %v1289_v9 }
 0x153   : > { %v1422_v38 = vld [vmem:[#allocation2 + $0x68] sm:$0xff] }
 0x154   : > { %v1500_v24 = vadd.f32 %v1480_v62, %v1422_v38  ;;  %1409 = vst.msk [vmem:[#allocation2 + $0x70] sm:$0xff] %vm957_vm8, %v1395_v61  ;;  %v1521_v3 = vld [vmem:[#allocation2 + $0x30] sm:$0xff] }
 0x155   : > { %v1599_v58 = vadd.f32 %v3436_v15, %v1521_v3  ;;  %v1527_v45 = vld [vmem:[#allocation2 + $0x60] sm:$0xff] }
 0x156   : > { %1514 = vst.msk [vmem:[#allocation2 + $0x68] sm:$0xff] %vm957_vm8, %v1500_v24  ;;  %v1605_v47 = vadd.f32 %v1583_v59, %v1527_v45  ;;  %v1589_v34 = vpop.f32.mrf.mxu0 }
 0x157   : > { %1613 = vst.msk [vmem:[#allocation2 + $0x30] sm:$0xff] %vm957_vm8, %v1599_v58 }
 0x158   : > { %1619 = vst.msk [vmem:[#allocation2 + $0x60] sm:$0xff] %vm957_vm8, %v1605_v47  ;;  %v1486_v18 = vpop.f32.mrf.mxu3 }
 0x159   : > { %v1319_v35 = vld [vmem:[#allocation2 + $0x78] sm:$0xff] }
 0x15a   : > { %v1396_v0 = vadd.f32 %v3386_v37, %v1319_v35 }
 0x15b   : > { %v1423_v36 = vld [vmem:[#allocation2 + $0x70] sm:$0xff] }
 0x15c   : > { %v1501_v41 = vadd.f32 %v1483_v42, %v1423_v36  ;;  %1410 = vst.msk [vmem:[#allocation2 + $0x78] sm:$0xff] %vm957_vm8, %v1396_v0 }
 0x15d   : > { %v1528_v50 = vld [vmem:[#allocation2 + $0x68] sm:$0xff] }
 0x15e   : > { %1515 = vst.msk [vmem:[#allocation2 + $0x70] sm:$0xff] %vm957_vm8, %v1501_v41  ;;  %v1606_v15 = vadd.f32 %v1586_v60, %v1528_v50  ;;  %v1592_v37 = vpop.f32.mrf.mxu0 }
 0x160   : > { %1620 = vst.msk [vmem:[#allocation2 + $0x68] sm:$0xff] %vm957_vm8, %v1606_v15 }
 0x163   : > { %v1424_v11 = vld [vmem:[#allocation2 + $0x78] sm:$0xff] }
 0x164   : > { %v1502_v8 = vadd.f32 %v1486_v18, %v1424_v11 }
 0x165   : > { %v1529_v31 = vld [vmem:[#allocation2 + $0x70] sm:$0xff] }
 0x166   : > { %v1607_v5 = vadd.f32 %v1589_v34, %v1529_v31  ;;  %1516 = vst.msk [vmem:[#allocation2 + $0x78] sm:$0xff] %vm957_vm8, %v1502_v8 }
 0x168   : > { %1621 = vst.msk [vmem:[#allocation2 + $0x70] sm:$0xff] %vm957_vm8, %v1607_v5 }
 0x16c   : > { %1626 = sbr.rel (%p2570_p11) target bundleno = 529 (0x211), region = 48 }
 0x16d   : > { %v1530_v12 = vld [vmem:[#allocation2 + $0x78] sm:$0xff] }
 0x16e   : > { %v1608_v44 = vadd.f32 %v1592_v37, %v1530_v12 }
 0x170   : > { %1622 = vst.msk [vmem:[#allocation2 + $0x78] sm:$0xff] %vm957_vm8, %v1608_v44 }
 0x171   : > { %v1643_v23 = vld [vmem:[%s3820_s3] sm:$0xf]  ;;  %v1628_v43 = vld [vmem:[%s2933_s19 + $0x8] sm:$0xff]  ;;  %v2574_v10 = vld [vmem:[%s3820_s3 + $0x4] sm:$0xf] }
 0x172   : > { %v1627_v2 = vld [vmem:[%s2933_s19] sm:$0xff]  ;;  %2655 = vmatpush.msk.msra.mxu3 %vm888_vm0, %v1643_v23  ;;  %2571 = vmatpush.msk.msra.mxu0 %vm888_vm0, %v1643_v23  ;;  %v1630_v55 = vrot.slane %v1628_v43, 7  ;;  %v2578_v25 = vld [vmem:[%s3820_s3 + $0x8] sm:$0xf]  ;;  %v1636_v48 = vrot.slane %v1628_v43, 1 }
 0x173   : > { %v1629_v21 = vrot.slane %v1627_v2, 7  ;;  %2575 = vmatpush.msk.msra.mxu1 %vm888_vm0, %v2574_v10  ;;  %2579 = vmatpush.msk.msra.mxu2 %vm888_vm0, %v2578_v25  ;;  %v1635_v14 = vrot.slane %v1627_v2, 1  ;;  %v1641_v51 = vld [vmem:[#allocation2] sm:$0xff]  ;;  %v1642_v61 = vld [vmem:[#allocation2 + $0x8] sm:$0xff] }
 0x174   : > { %2576 = vmatmul.msk.f32.vlgmr.msra.gmra.mxu1 %vm839_vm1, %v1627_v2 }
 0x175   : > { %v1631_v52 = vsel %vm675_vm3, %v1629_v21, %v1630_v55  ;;  %v1632_v54 = vsel %vm675_vm3, %v1630_v55, %v1629_v21  ;;  %v1637_v62 = vsel %vm772_vm2, %v1635_v14, %v1636_v48  ;;  %v1638_v59 = vsel %vm772_vm2, %v1636_v48, %v1635_v14 }
 0x176   : > { %2573 = vmatmul.msk.f32.vlgmr.msra.gmra.mxu3 %vm839_vm1, %v1631_v52  ;;  %v1633_v29 = vsel %vm3088_vm10, %v1632_v54, 0.0  ;;  %2580 = vmatmul.msk.f32.vlgmr.msra.gmra.mxu2 %vm839_vm1, %v1637_v62  ;;  %v1640_v20 = vsel %vm2918_vm4, %v1638_v59, 0.0 }
 0x177   : > { %2572 = vmatmul.msk.f32.vlgmr.msra.gmra.mxu0 %vm839_vm1, %v1633_v29 }
 0x17c   : > { %2577 = vmatmul.msk.f32.gmra.mxu1 %vm839_vm1, %v1628_v43 }
 0x17e   : > { %2581 = vmatmul.msk.f32.gmra.mxu2 %vm839_vm1, %v1640_v20 }
 0x1f1   : > { %v1709_v38 = vpop.f32.mrf.mxu1 }
 0x1f4   : > { %v1670_v9 = vpop.f32.mrf.mxu0 }
 0x1f5   : > { %v1676_v16 = vadd.f32 %v1670_v9, %v1641_v51 }
 0x1f7   : > { %1678 = vst.msk [vmem:[#allocation2] sm:$0xff] %vm957_vm8, %v1676_v16 }
 0x1f9   : > { %v1673_v24 = vpop.f32.mrf.mxu3  ;;  %v1712_v42 = vpop.f32.mrf.mxu1 }
 0x1fa   : > { %v1677_v3 = vadd.f32 %v1673_v24, %v1642_v61  ;;  %v1748_v60 = vpop.f32.mrf.mxu2 }
 0x1fc   : > { %1679 = vst.msk [vmem:[#allocation2 + $0x8] sm:$0xff] %vm957_vm8, %v1677_v3 }
 0x1fe   : > { %v1680_v58 = vld [vmem:[#allocation2] sm:$0xff] }
 0x1ff   : > { %v1715_v45 = vadd.f32 %v1709_v38, %v1680_v58 }
 0x201   : > { %1717 = vst.msk [vmem:[#allocation2] sm:$0xff] %vm957_vm8, %v1715_v45 }
 0x202   : > { %v1751_v41 = vpop.f32.mrf.mxu2 }
 0x203   : > { %v1681_v47 = vld [vmem:[#allocation2 + $0x8] sm:$0xff] }
 0x204   : > { %v1716_v35 = vadd.f32 %v1712_v42, %v1681_v47 }
 0x206   : > { %1718 = vst.msk [vmem:[#allocation2 + $0x8] sm:$0xff] %vm957_vm8, %v1716_v35 }
 0x208   : > { %v1719_v36 = vld [vmem:[#allocation2] sm:$0xff] }
 0x209   : > { %v1754_v0 = vadd.f32 %v1748_v60, %v1719_v36 }
 0x20b   : > { %1756 = vst.msk [vmem:[#allocation2] sm:$0xff] %vm957_vm8, %v1754_v0 }
 0x20d   : > { %v1720_v50 = vld [vmem:[#allocation2 + $0x8] sm:$0xff] }
 0x20e   : > { %v1755_v15 = vadd.f32 %v1751_v41, %v1720_v50 }
 0x210   : > { %1757 = vst.msk [vmem:[#allocation2 + $0x8] sm:$0xff] %vm957_vm8, %v1755_v15 }
 0x211 PF: > { %v2582_v18 = vld [vmem:[%s3820_s3 + $0x18] sm:$0xf]  ;;  %v2598_v34 = vld [vmem:[%s3820_s3 + $0x1c] sm:$0xf]  ;;  %v2614_v11 = vld [vmem:[%s3820_s3 + $0x20] sm:$0xf] }
 0x212   : > { %2583 = vmatpush.msk.msra.mxu0 %vm888_vm0, %v2582_v18  ;;  %2656 = vmatpush.msk.msra.mxu3 %vm888_vm0, %v2582_v18  ;;  %v3895_v8 = vld [vmem:[#allocation21_spill] sm:$0xff]  ;;  %v3898_v37 = vld [vmem:[#allocation22_spill] sm:$0xff]  ;;  %v1758_v12 = vld [vmem:[#allocation2] sm:$0xff]  ;;  %p2630_p12 = scmp.ge.s32.totalorder %s2724_s21, 1 }
 0x213   : > { %2584 = vmatmul.msk.f32.vlgmr.msra.gmra.mxu0 %vm839_vm1, %v3154_v7  ;;  %2595 = vmatmul.msk.f32.vlgmr.msra.gmra.mxu3 %vm839_vm1, %v3152_v4  ;;  %v3889_v4 = vld [vmem:[#allocation12_spill] sm:$0xff]  ;;  %v3890_v7 = vld [vmem:[#allocation25_spill] sm:$0xff]  ;;  %v1769_v43 = vld [vmem:[#allocation2 + $0x58] sm:$0xff] }
 0x214   : > { %2599 = vmatpush.msk.msra.mxu1 %vm888_vm0, %v2598_v34  ;;  %2615 = vmatpush.msk.msra.mxu2 %vm888_vm0, %v2614_v11  ;;  %v3896_v31 = vld [vmem:[#allocation17_spill] sm:$0xff]  ;;  %v1770_v62 = vld [vmem:[#allocation2 + $0x60] sm:$0xff]  ;;  %v1771_v45 = vld [vmem:[#allocation2 + $0x68] sm:$0xff] }
 0x215   : > { %2600 = vmatmul.msk.f32.vlgmr.msra.gmra.mxu1 %vm839_vm1, %v2876_v13  ;;  %2616 = vmatmul.msk.f32.vlgmr.msra.gmra.mxu2 %vm839_vm1, %v2988_v39  ;;  %v3876_v13 = vld [vmem:[#allocation14_spill] sm:$0xff]  ;;  %v3882_v39 = vld [vmem:[#allocation23_spill] sm:$0xff]  ;;  %v3897_v5 = vld [vmem:[#allocation9_spill] sm:$0xff] }
 0x216   : > { %2657 = vmatpush.msk.msrb.mxu3 %vm888_vm0, %v2598_v34  ;;  %v1760_v59 = vld [vmem:[#allocation2 + $0x10] sm:$0xff]  ;;  %v1761_v60 = vld [vmem:[#allocation2 + $0x18] sm:$0xff] }
 0x217   : > { %v1759_v21 = vld [vmem:[#allocation2 + $0x8] sm:$0xff] }
 0x218   : > { %2658 = vmatpush.msk.msra.mxu3 %vm888_vm0, %v2614_v11 }
 0x21b   : > { %2585 = vmatmul.msk.f32.gmra.mxu0 %vm839_vm1, %v3173_v27  ;;  %2596 = vmatmul.msk.f32.gmra.mxu3 %vm839_vm1, %v3333_v40  ;;  %v3891_v27 = vld [vmem:[#allocation4_spill] sm:$0xff]  ;;  %v3893_v40 = vld [vmem:[#allocation15_spill] sm:$0xff] }
 0x21d   : > { %2601 = vmatmul.msk.f32.gmra.mxu1 %vm839_vm1, %v2960_v32  ;;  %2617 = vmatmul.msk.f32.gmra.mxu2 %vm839_vm1, %v3013_v49  ;;  %v3880_v32 = vld [vmem:[#allocation16_spill] sm:$0xff]  ;;  %v3884_v49 = vld [vmem:[#allocation18_spill] sm:$0xff] }
 0x223   : > { %2586 = vmatmul.msk.f32.gmra.mxu0 %vm839_vm1, %v3193_v46  ;;  %2597 = vmatmul.msk.f32.gmra.mxu3 %vm839_vm1, %v3351_v57  ;;  %v3892_v46 = vld [vmem:[#allocation20_spill] sm:$0xff]  ;;  %v3894_v57 = vld [vmem:[#allocation6_spill] sm:$0xff] }
 0x225   : > { %2602 = vmatmul.msk.f32.gmra.mxu1 %vm839_vm1, %v2885_v17  ;;  %2618 = vmatmul.msk.f32.gmra.mxu2 %vm839_vm1, %v3035_v56  ;;  %v3877_v17 = vld [vmem:[#allocation8_spill] sm:$0xff] }
 0x226   : > { %v3886_v56 = vld [vmem:[#allocation24_spill] sm:$0xff] }
 0x22b   : > { %2587 = vmatmul.msk.f32.gmra.mxu0 %vm839_vm1, %v2928_v28  ;;  %2611 = vmatmul.msk.f32.vlgmr.msrb.gmra.mxu3 %vm839_vm1, %v3025_v53  ;;  %v3878_v28 = vld [vmem:[#allocation13_spill] sm:$0xff]  ;;  %v3885_v53 = vld [vmem:[#allocation11_spill] sm:$0xff] }
 0x22d   : > { %2603 = vmatmul.msk.f32.gmra.mxu1 %vm839_vm1, %v2896_v19  ;;  %2619 = vmatmul.msk.f32.gmra.mxu2 %vm839_vm1, %v3057_v1  ;;  %v3879_v19 = vld [vmem:[#allocation5_spill] sm:$0xff]  ;;  %v3888_v1 = vld [vmem:[#allocation19_spill] sm:$0xff] }
 0x233   : > { %2588 = vmatmul.msk.f32.gmra.mxu0 %vm839_vm1, %v2966_v33  ;;  %2612 = vmatmul.msk.f32.gmra.mxu3 %vm839_vm1, %v3049_v63  ;;  %v3881_v33 = vld [vmem:[#allocation10_spill] sm:$0xff]  ;;  %v3887_v63 = vld [vmem:[#allocation3_spill] sm:$0xff] }
 0x235   : > { %2604 = vmatmul.msk.f32.gmra.mxu1 %vm839_vm1, %v2910_v22  ;;  %2620 = vmatmul.msk.f32.gmra.mxu2 %vm839_vm1, %v3876_v13  ;;  %v3883_v22 = vld [vmem:[#allocation7_spill] sm:$0xff] }
 0x23b   : > { %2589 = vmatmul.msk.f32.gmra.mxu0 %vm839_vm1, %v3877_v17  ;;  %2613 = vmatmul.msk.f32.gmra.mxu3 %vm839_vm1, %v3878_v28  ;;  %v1762_v17 = vld [vmem:[#allocation2 + $0x20] sm:$0xff] }
 0x23d   : > { %2605 = vmatmul.msk.f32.gmra.mxu1 %vm839_vm1, %v3879_v19  ;;  %2621 = vmatmul.msk.f32.gmra.mxu2 %vm839_vm1, %v3880_v32 }
 0x243   : > { %2590 = vmatmul.msk.f32.gmra.mxu0 %vm839_vm1, %v3881_v33  ;;  %2627 = vmatmul.msk.f32.vlgmr.msra.gmra.mxu3 %vm839_vm1, %v3882_v39 }
 0x245   : > { %2606 = vmatmul.msk.f32.gmra.mxu1 %vm839_vm1, %v3883_v22  ;;  %2622 = vmatmul.msk.f32.gmra.mxu2 %vm839_vm1, %v3884_v49 }
 0x24b   : > { %2591 = vmatmul.msk.f32.gmra.mxu0 %vm839_vm1, %v3885_v53  ;;  %2628 = vmatmul.msk.f32.gmra.mxu3 %vm839_vm1, %v3886_v56 }
 0x24d   : > { %2607 = vmatmul.msk.f32.gmra.mxu1 %vm839_vm1, %v3887_v63  ;;  %2623 = vmatmul.msk.f32.gmra.mxu2 %vm839_vm1, %v3888_v1 }
 0x253   : > { %2592 = vmatmul.msk.f32.gmra.mxu0 %vm839_vm1, %v3889_v4  ;;  %2629 = vmatmul.msk.f32.gmra.mxu3 %vm839_vm1, %v3890_v7  ;;  %v1763_v4 = vld [vmem:[#allocation2 + $0x28] sm:$0xff] }
 0x255   : > { %2608 = vmatmul.msk.f32.gmra.mxu1 %vm839_vm1, %v3891_v27  ;;  %2624 = vmatmul.msk.f32.gmra.mxu2 %vm839_vm1, %v3892_v46 }
 0x25b   : > { %2593 = vmatmul.msk.f32.gmra.mxu0 %vm839_vm1, %v3893_v40 }
 0x25d   : > { %2609 = vmatmul.msk.f32.gmra.mxu1 %vm839_vm1, %v3894_v57  ;;  %2625 = vmatmul.msk.f32.gmra.mxu2 %vm839_vm1, %v3895_v8 }
 0x263   : > { %2594 = vmatmul.msk.f32.gmra.mxu0 %vm839_vm1, %v3896_v31 }
 0x265   : > { %2610 = vmatmul.msk.f32.gmra.mxu1 %vm839_vm1, %v3897_v5  ;;  %2626 = vmatmul.msk.f32.gmra.mxu2 %vm839_vm1, %v3898_v37 }
 0x290   : > { %v1794_v44 = vpop.f32.mrf.mxu0 }
 0x291   : > { %v1836_v23 = vadd.f32 %v1794_v44, %v1758_v12 }
 0x292   : > { %v1900_v2 = vpop.f32.mrf.mxu1 }
 0x293   : > { %1850 = vst.msk [vmem:[#allocation2] sm:$0xff] %vm957_vm8, %v1836_v23  ;;  %v1764_v23 = vld [vmem:[#allocation2 + $0x30] sm:$0xff] }
 0x296   : > { %v1827_v55 = vpop.f32.mrf.mxu3 }
 0x297   : > { %v1847_v10 = vadd.f32 %v1827_v55, %v1769_v43 }
 0x298   : > { %v1797_v25 = vpop.f32.mrf.mxu0  ;;  %v2006_v14 = vpop.f32.mrf.mxu2 }
 0x299   : > { %v1837_v48 = vadd.f32 %v1797_v25, %v1759_v21  ;;  %1861 = vst.msk [vmem:[#allocation2 + $0x58] sm:$0xff] %vm957_vm8, %v1847_v10 }
 0x29a   : > { %v1864_v52 = vld [vmem:[#allocation2] sm:$0xff]  ;;  %v1903_v54 = vpop.f32.mrf.mxu1 }
 0x29b   : > { %1851 = vst.msk [vmem:[#allocation2 + $0x8] sm:$0xff] %vm957_vm8, %v1837_v48  ;;  %v1942_v29 = vadd.f32 %v1900_v2, %v1864_v52 }
 0x29d   : > { %1956 = vst.msk [vmem:[#allocation2] sm:$0xff] %vm957_vm8, %v1942_v29 }
 0x29e   : > { %v1830_v20 = vpop.f32.mrf.mxu3 }
 0x29f   : > { %v1848_v51 = vadd.f32 %v1830_v20, %v1770_v62  ;;  %v1765_v62 = vld [vmem:[#allocation2 + $0x38] sm:$0xff] }
 0x2a0   : > { %v1800_v9 = vpop.f32.mrf.mxu0  ;;  %v2009_v16 = vpop.f32.mrf.mxu2  ;;  %v1875_v11 = vld [vmem:[#allocation2 + $0x58] sm:$0xff] }
 0x2a1   : > { %v1838_v61 = vadd.f32 %v1800_v9, %v1760_v59  ;;  %1862 = vst.msk [vmem:[#allocation2 + $0x60] sm:$0xff] %vm957_vm8, %v1848_v51 }
 0x2a2   : > { %v1865_v38 = vld [vmem:[#allocation2 + $0x8] sm:$0xff]  ;;  %v1906_v24 = vpop.f32.mrf.mxu1 }
 0x2a3   : > { %1852 = vst.msk [vmem:[#allocation2 + $0x10] sm:$0xff] %vm957_vm8, %v1838_v61  ;;  %v1943_v3 = vadd.f32 %v1903_v54, %v1865_v38 }
 0x2a4   : > { %v1970_v58 = vld [vmem:[#allocation2] sm:$0xff] }
 0x2a5   : > { %1957 = vst.msk [vmem:[#allocation2 + $0x8] sm:$0xff] %vm957_vm8, %v1943_v3  ;;  %v2048_v42 = vadd.f32 %v2006_v14, %v1970_v58 }
 0x2a6   : > { %v1833_v47 = vpop.f32.mrf.mxu3 }
 0x2a7   : > { %2062 = vst.msk [vmem:[#allocation2] sm:$0xff] %vm957_vm8, %v2048_v42  ;;  %v1849_v35 = vadd.f32 %v1833_v47, %v1771_v45  ;;  %v1766_v42 = vld [vmem:[#allocation2 + $0x40] sm:$0xff] }
 0x2a8   : > { %v1803_v36 = vpop.f32.mrf.mxu0  ;;  %v2012_v0 = vpop.f32.mrf.mxu2  ;;  %v1876_v63 = vld [vmem:[#allocation2 + $0x60] sm:$0xff] }
 0x2a9   : > { %v1839_v41 = vadd.f32 %v1803_v36, %v1761_v60  ;;  %1863 = vst.msk [vmem:[#allocation2 + $0x68] sm:$0xff] %vm957_vm8, %v1849_v35 }
 0x2aa   : > { %v1866_v50 = vld [vmem:[#allocation2 + $0x10] sm:$0xff]  ;;  %v1909_v15 = vpop.f32.mrf.mxu1 }
 0x2ab   : > { %1853 = vst.msk [vmem:[#allocation2 + $0x18] sm:$0xff] %vm957_vm8, %v1839_v41  ;;  %v1944_v18 = vadd.f32 %v1906_v24, %v1866_v50 }
 0x2ac   : > { %v1971_v34 = vld [vmem:[#allocation2 + $0x8] sm:$0xff] }
 0x2ad   : > { %1958 = vst.msk [vmem:[#allocation2 + $0x10] sm:$0xff] %vm957_vm8, %v1944_v18  ;;  %v2049_v13 = vadd.f32 %v2009_v16, %v1971_v34 }
 0x2ae   : > { %v1933_v28 = vpop.f32.mrf.mxu3 }
 0x2af   : > { %2063 = vst.msk [vmem:[#allocation2 + $0x8] sm:$0xff] %vm957_vm8, %v2049_v13  ;;  %v1953_v19 = vadd.f32 %v1933_v28, %v1875_v11  ;;  %v1767_v13 = vld [vmem:[#allocation2 + $0x48] sm:$0xff] }
 0x2b0   : > { %v1806_v32 = vpop.f32.mrf.mxu0  ;;  %v2015_v33 = vpop.f32.mrf.mxu2  ;;  %v1877_v12 = vld [vmem:[#allocation2 + $0x68] sm:$0xff] }
 0x2b1   : > { %v1840_v39 = vadd.f32 %v1806_v32, %v1762_v17  ;;  %1967 = vst.msk [vmem:[#allocation2 + $0x58] sm:$0xff] %vm957_vm8, %v1953_v19 }
 0x2b2   : > { %v1867_v22 = vld [vmem:[#allocation2 + $0x18] sm:$0xff]  ;;  %v1912_v49 = vpop.f32.mrf.mxu1 }
 0x2b3   : > { %1854 = vst.msk [vmem:[#allocation2 + $0x20] sm:$0xff] %vm957_vm8, %v1840_v39  ;;  %v1945_v53 = vadd.f32 %v1909_v15, %v1867_v22 }
 0x2b4   : > { %v1972_v56 = vld [vmem:[#allocation2 + $0x10] sm:$0xff] }
 0x2b5   : > { %1959 = vst.msk [vmem:[#allocation2 + $0x18] sm:$0xff] %vm957_vm8, %v1945_v53  ;;  %v2050_v1 = vadd.f32 %v2012_v0, %v1972_v56  ;;  %v1768_v53 = vld [vmem:[#allocation2 + $0x50] sm:$0xff] }
 0x2b6   : > { %v1936_v7 = vpop.f32.mrf.mxu3 }
 0x2b7   : > { %2064 = vst.msk [vmem:[#allocation2 + $0x10] sm:$0xff] %vm957_vm8, %v2050_v1  ;;  %v1954_v27 = vadd.f32 %v1936_v7, %v1876_v63 }
 0x2b8   : > { %v1809_v46 = vpop.f32.mrf.mxu0  ;;  %v2018_v40 = vpop.f32.mrf.mxu2  ;;  %v1981_v54 = vld [vmem:[#allocation2 + $0x58] sm:$0xff] }
 0x2b9   : > { %v1841_v57 = vadd.f32 %v1809_v46, %v1763_v4  ;;  %1968 = vst.msk [vmem:[#allocation2 + $0x60] sm:$0xff] %vm957_vm8, %v1954_v27 }
 0x2ba   : > { %v1868_v8 = vld [vmem:[#allocation2 + $0x20] sm:$0xff]  ;;  %v1915_v31 = vpop.f32.mrf.mxu1 }
 0x2bb   : > { %1855 = vst.msk [vmem:[#allocation2 + $0x28] sm:$0xff] %vm957_vm8, %v1841_v57  ;;  %v1946_v5 = vadd.f32 %v1912_v49, %v1868_v8 }
 0x2bc   : > { %v1973_v37 = vld [vmem:[#allocation2 + $0x18] sm:$0xff] }
 0x2bd   : > { %1960 = vst.msk [vmem:[#allocation2 + $0x20] sm:$0xff] %vm957_vm8, %v1946_v5  ;;  %v2051_v44 = vadd.f32 %v2015_v33, %v1973_v37 }
 0x2be   : > { %v1939_v2 = vpop.f32.mrf.mxu3 }
 0x2bf   : > { %2065 = vst.msk [vmem:[#allocation2 + $0x18] sm:$0xff] %vm957_vm8, %v2051_v44  ;;  %v1955_v43 = vadd.f32 %v1939_v2, %v1877_v12 }
 0x2c0   : > { %v1812_v21 = vpop.f32.mrf.mxu0  ;;  %v2021_v55 = vpop.f32.mrf.mxu2  ;;  %v1982_v58 = vld [vmem:[#allocation2 + $0x60] sm:$0xff] }
 0x2c1   : > { %v1842_v10 = vadd.f32 %v1812_v21, %v1764_v23  ;;  %1969 = vst.msk [vmem:[#allocation2 + $0x68] sm:$0xff] %vm957_vm8, %v1955_v43 }
 0x2c2   : > { %v1869_v25 = vld [vmem:[#allocation2 + $0x28] sm:$0xff]  ;;  %v1918_v14 = vpop.f32.mrf.mxu1 }
 0x2c3   : > { %1856 = vst.msk [vmem:[#allocation2 + $0x30] sm:$0xff] %vm957_vm8, %v1842_v10  ;;  %v1947_v48 = vadd.f32 %v1915_v31, %v1869_v25 }
 0x2c4   : > { %v1974_v52 = vld [vmem:[#allocation2 + $0x20] sm:$0xff] }
 0x2c5   : > { %1961 = vst.msk [vmem:[#allocation2 + $0x28] sm:$0xff] %vm957_vm8, %v1947_v48  ;;  %v2052_v29 = vadd.f32 %v2018_v40, %v1974_v52 }
 0x2c6   : > { %v2039_v59 = vpop.f32.mrf.mxu3 }
 0x2c7   : > { %2066 = vst.msk [vmem:[#allocation2 + $0x20] sm:$0xff] %vm957_vm8, %v2052_v29  ;;  %v2059_v20 = vadd.f32 %v2039_v59, %v1981_v54 }
 0x2c8   : > { %v1815_v51 = vpop.f32.mrf.mxu0  ;;  %v2024_v38 = vpop.f32.mrf.mxu2  ;;  %v1983_v15 = vld [vmem:[#allocation2 + $0x68] sm:$0xff] }
 0x2c9   : > { %v1843_v9 = vadd.f32 %v1815_v51, %v1765_v62  ;;  %2073 = vst.msk [vmem:[#allocation2 + $0x58] sm:$0xff] %vm957_vm8, %v2059_v20 }
 0x2ca   : > { %v1870_v16 = vld [vmem:[#allocation2 + $0x30] sm:$0xff]  ;;  %v1921_v61 = vpop.f32.mrf.mxu1 }
 0x2cb   : > { %1857 = vst.msk [vmem:[#allocation2 + $0x38] sm:$0xff] %vm957_vm8, %v1843_v9  ;;  %v1948_v24 = vadd.f32 %v1918_v14, %v1870_v16 }
 0x2cc   : > { %v1975_v3 = vld [vmem:[#allocation2 + $0x28] sm:$0xff] }
 0x2cd   : > { %1962 = vst.msk [vmem:[#allocation2 + $0x30] sm:$0xff] %vm957_vm8, %v1948_v24  ;;  %v2053_v45 = vadd.f32 %v2021_v55, %v1975_v3 }
 0x2ce   : > { %v2042_v60 = vpop.f32.mrf.mxu3 }
 0x2cf   : > { %2067 = vst.msk [vmem:[#allocation2 + $0x28] sm:$0xff] %vm957_vm8, %v2053_v45  ;;  %v2060_v47 = vadd.f32 %v2042_v60, %v1982_v58 }
 0x2d0   : > { %v1818_v35 = vpop.f32.mrf.mxu0  ;;  %v2027_v34 = vpop.f32.mrf.mxu2 }
 0x2d1   : > { %v1844_v36 = vadd.f32 %v1818_v35, %v1766_v42  ;;  %2074 = vst.msk [vmem:[#allocation2 + $0x60] sm:$0xff] %vm957_vm8, %v2060_v47 }
 0x2d2   : > { %v1871_v0 = vld [vmem:[#allocation2 + $0x38] sm:$0xff]  ;;  %v1924_v18 = vpop.f32.mrf.mxu1 }
 0x2d3   : > { %1858 = vst.msk [vmem:[#allocation2 + $0x40] sm:$0xff] %vm957_vm8, %v1844_v36  ;;  %v1949_v41 = vadd.f32 %v1921_v61, %v1871_v0 }
 0x2d4   : > { %v1976_v50 = vld [vmem:[#allocation2 + $0x30] sm:$0xff] }
 0x2d5   : > { %1963 = vst.msk [vmem:[#allocation2 + $0x38] sm:$0xff] %vm957_vm8, %v1949_v41  ;;  %v2054_v11 = vadd.f32 %v2024_v38, %v1976_v50 }
 0x2d6   : > { %v2045_v17 = vpop.f32.mrf.mxu3 }
 0x2d7   : > { %2068 = vst.msk [vmem:[#allocation2 + $0x30] sm:$0xff] %vm957_vm8, %v2054_v11  ;;  %v2061_v28 = vadd.f32 %v2045_v17, %v1983_v15 }
 0x2d8   : > { %v1821_v19 = vpop.f32.mrf.mxu0  ;;  %v2030_v63 = vpop.f32.mrf.mxu2 }
 0x2d9   : > { %v1845_v32 = vadd.f32 %v1821_v19, %v1767_v13  ;;  %2075 = vst.msk [vmem:[#allocation2 + $0x68] sm:$0xff] %vm957_vm8, %v2061_v28 }
 0x2da   : > { %v1872_v33 = vld [vmem:[#allocation2 + $0x40] sm:$0xff]  ;;  %v1927_v56 = vpop.f32.mrf.mxu1 }
 0x2db   : > { %1859 = vst.msk [vmem:[#allocation2 + $0x48] sm:$0xff] %vm957_vm8, %v1845_v32  ;;  %v1950_v39 = vadd.f32 %v1924_v18, %v1872_v33 }
 0x2dc   : > { %v1977_v22 = vld [vmem:[#allocation2 + $0x38] sm:$0xff] }
 0x2dd   : > { %1964 = vst.msk [vmem:[#allocation2 + $0x40] sm:$0xff] %vm957_vm8, %v1950_v39  ;;  %v2055_v49 = vadd.f32 %v2027_v34, %v1977_v22 }
 0x2df   : > { %2069 = vst.msk [vmem:[#allocation2 + $0x38] sm:$0xff] %vm957_vm8, %v2055_v49 }
 0x2e0   : > { %v1824_v1 = vpop.f32.mrf.mxu0  ;;  %v2033_v8 = vpop.f32.mrf.mxu2 }
 0x2e1   : > { %v1846_v4 = vadd.f32 %v1824_v1, %v1768_v53 }
 0x2e2   : > { %v1873_v7 = vld [vmem:[#allocation2 + $0x48] sm:$0xff]  ;;  %v1930_v57 = vpop.f32.mrf.mxu1 }
 0x2e3   : > { %1860 = vst.msk [vmem:[#allocation2 + $0x50] sm:$0xff] %vm957_vm8, %v1846_v4  ;;  %v1951_v27 = vadd.f32 %v1927_v56, %v1873_v7 }
 0x2e4   : > { %v1978_v46 = vld [vmem:[#allocation2 + $0x40] sm:$0xff] }
 0x2e5   : > { %1965 = vst.msk [vmem:[#allocation2 + $0x48] sm:$0xff] %vm957_vm8, %v1951_v27  ;;  %v2056_v40 = vadd.f32 %v2030_v63, %v1978_v46 }
 0x2e7   : > { %2070 = vst.msk [vmem:[#allocation2 + $0x40] sm:$0xff] %vm957_vm8, %v2056_v40 }
 0x2e8   : > { %v2036_v44 = vpop.f32.mrf.mxu2 }
 0x2ea   : > { %v1874_v31 = vld [vmem:[#allocation2 + $0x50] sm:$0xff] }
 0x2eb   : > { %v1952_v5 = vadd.f32 %v1930_v57, %v1874_v31 }
 0x2ec   : > { %v1979_v37 = vld [vmem:[#allocation2 + $0x48] sm:$0xff] }
 0x2ed   : > { %1966 = vst.msk [vmem:[#allocation2 + $0x50] sm:$0xff] %vm957_vm8, %v1952_v5  ;;  %v2057_v12 = vadd.f32 %v2033_v8, %v1979_v37 }
 0x2ef   : > { %2071 = vst.msk [vmem:[#allocation2 + $0x48] sm:$0xff] %vm957_vm8, %v2057_v12 }
 0x2f3   : > { %2079 = sbr.rel (%p2630_p12) target bundleno = 919 (0x397), region = 52 }
 0x2f4   : > { %v1980_v23 = vld [vmem:[#allocation2 + $0x50] sm:$0xff] }
 0x2f5   : > { %v2058_v2 = vadd.f32 %v2036_v44, %v1980_v23 }
 0x2f7   : > { %2072 = vst.msk [vmem:[#allocation2 + $0x50] sm:$0xff] %vm957_vm8, %v2058_v2 }
 0x2f8   : > { %v2631_v43 = vld [vmem:[%s3820_s3 + $0x18] sm:$0xf]  ;;  %v2080_v21 = vld [vmem:[%s2940_s22] sm:$0xff]  ;;  %v2081_v55 = vld [vmem:[%s2940_s22 + $0x8] sm:$0xff] }
 0x2f9   : > { %2659 = vmatpush.msk.msra.mxu3 %vm888_vm0, %v2631_v43  ;;  %2632 = vmatpush.msk.msra.mxu0 %vm888_vm0, %v2631_v43  ;;  %v2082_v10 = vrot.slane %v2080_v21, 7  ;;  %v2083_v25 = vrot.slane %v2081_v55, 7  ;;  %v2635_v14 = vld [vmem:[%s3820_s3 + $0x1c] sm:$0xf]  ;;  %v2639_v48 = vld [vmem:[%s3820_s3 + $0x20] sm:$0xf] }
 0x2fa   : > { %2636 = vmatpush.msk.msra.mxu1 %vm888_vm0, %v2635_v14  ;;  %2640 = vmatpush.msk.msra.mxu2 %vm888_vm0, %v2639_v48  ;;  %v2088_v52 = vrot.slane %v2080_v21, 1  ;;  %v2089_v54 = vrot.slane %v2081_v55, 1  ;;  %v2094_v16 = vld [vmem:[#allocation2 + $0x70] sm:$0xff]  ;;  %v2095_v38 = vld [vmem:[#allocation2 + $0x78] sm:$0xff] }
 0x2fb   : > { %v2084_v29 = vsel %vm675_vm3, %v2082_v10, %v2083_v25  ;;  %v2085_v62 = vsel %vm675_vm3, %v2083_v25, %v2082_v10  ;;  %2637 = vmatmul.msk.f32.vlgmr.msra.gmra.mxu1 %vm839_vm1, %v2080_v21 }
 0x2fc   : > { %2634 = vmatmul.msk.f32.vlgmr.msra.gmra.mxu3 %vm839_vm1, %v2084_v29  ;;  %v2086_v59 = vsel %vm3088_vm10, %v2085_v62, 0.0  ;;  %v2090_v20 = vsel %vm772_vm2, %v2088_v52, %v2089_v54  ;;  %v2091_v51 = vsel %vm772_vm2, %v2089_v54, %v2088_v52 }
 0x2fd   : > { %2633 = vmatmul.msk.f32.vlgmr.msra.gmra.mxu0 %vm839_vm1, %v2086_v59  ;;  %2641 = vmatmul.msk.f32.vlgmr.msra.gmra.mxu2 %vm839_vm1, %v2090_v20  ;;  %v2093_v9 = vsel %vm2918_vm4, %v2091_v51, 0.0 }
 0x303   : > { %2638 = vmatmul.msk.f32.gmra.mxu1 %vm839_vm1, %v2081_v55 }
 0x305   : > { %2642 = vmatmul.msk.f32.gmra.mxu2 %vm839_vm1, %v2093_v9 }
 0x378   : > { %v2162_v24 = vpop.f32.mrf.mxu1 }
 0x37a   : > { %v2123_v30 = vpop.f32.mrf.mxu0 }
 0x37b   : > { %v2129_v61 = vadd.f32 %v2123_v30, %v2094_v16 }
 0x37d   : > { %2131 = vst.msk [vmem:[#allocation2 + $0x70] sm:$0xff] %vm957_vm8, %v2129_v61 }
 0x37f   : > { %v2126_v3 = vpop.f32.mrf.mxu3 }
 0x380   : > { %v2130_v58 = vadd.f32 %v2126_v3, %v2095_v38  ;;  %v2165_v26 = vpop.f32.mrf.mxu1  ;;  %v2201_v42 = vpop.f32.mrf.mxu2 }
 0x382   : > { %2132 = vst.msk [vmem:[#allocation2 + $0x78] sm:$0xff] %vm957_vm8, %v2130_v58 }
 0x384   : > { %v2133_v6 = vld [vmem:[#allocation2 + $0x70] sm:$0xff] }
 0x385   : > { %v2168_v45 = vadd.f32 %v2162_v24, %v2133_v6 }
 0x387   : > { %2170 = vst.msk [vmem:[#allocation2 + $0x70] sm:$0xff] %vm957_vm8, %v2168_v45 }
 0x388   : > { %v2204_v0 = vpop.f32.mrf.mxu2 }
 0x389   : > { %v2134_v60 = vld [vmem:[#allocation2 + $0x78] sm:$0xff] }
 0x38a   : > { %v2169_v47 = vadd.f32 %v2165_v26, %v2134_v60 }
 0x38c   : > { %2171 = vst.msk [vmem:[#allocation2 + $0x78] sm:$0xff] %vm957_vm8, %v2169_v47 }
 0x38e   : > { %v2172_v35 = vld [vmem:[#allocation2 + $0x70] sm:$0xff] }
 0x38f   : > { %v2207_v36 = vadd.f32 %v2201_v42, %v2172_v35 }
 0x391   : > { %2209 = vst.msk [vmem:[#allocation2 + $0x70] sm:$0xff] %vm957_vm8, %v2207_v36 }
 0x393   : > { %v2173_v41 = vld [vmem:[#allocation2 + $0x78] sm:$0xff] }
 0x394   : > { %v2208_v50 = vadd.f32 %v2204_v0, %v2173_v41 }
 0x396   : > { %2210 = vst.msk [vmem:[#allocation2 + $0x78] sm:$0xff] %vm957_vm8, %v2208_v50 }
 0x397 PF: > { %v2211_v15 = vld [vmem:[#allocation2] sm:$0xff]  ;;  %v2212_v11 = vld [vmem:[#allocation2 + $0x8] sm:$0xff]  ;;  %v2213_v28 = vld [vmem:[#allocation2 + $0x10] sm:$0xff] }
 0x398   : > { %v2700_v18 = vld [vmem:[%s3821_s4] ss:$0 sm:$0xff]  ;;  %v2214_v19 = vld [vmem:[#allocation2 + $0x18] sm:$0xff]  ;;  %v2216_v49 = vld [vmem:[#allocation2 + $0x28] sm:$0xff] }
 0x399   : > { %v3752_v34 = vld [vmem:[%s3822_s5] ss:$0 sm:$0xff]  ;;  %v2231_v13 = vmul.f32 %v2700_v18, %v2211_v15  ;;  %v2232_v17 = vmul.f32 %v2700_v18, %v2212_v11  ;;  %v2233_v33 = vmul.f32 %v2700_v18, %v2213_v28  ;;  %v2234_v39 = vmul.f32 %v2700_v18, %v2214_v19  ;;  %v2217_v53 = vld [vmem:[#allocation2 + $0x30] sm:$0xff]  ;;  %v2218_v56 = vld [vmem:[#allocation2 + $0x38] sm:$0xff] }
 0x39a   : > { %v2215_v32 = vld [vmem:[#allocation2 + $0x20] sm:$0xff]  ;;  %v2236_v4 = vmul.f32 %v2700_v18, %v2216_v49  ;;  %v2237_v7 = vmul.f32 %v2700_v18, %v2217_v53  ;;  %v2238_v57 = vmul.f32 %v2700_v18, %v2218_v56  ;;  %v2220_v31 = vld [vmem:[#allocation2 + $0x48] sm:$0xff]  ;;  %v2222_v2 = vld [vmem:[#allocation2 + $0x58] sm:$0xff] }
 0x39b   : > { %v2235_v22 = vmul.f32 %v2700_v18, %v2215_v32  ;;  %v2251_v63 = vadd.f32 %v3752_v34, %v2231_v13  ;;  %v2252_v1 = vadd.f32 %v3752_v34, %v2232_v17  ;;  %v2253_v27 = vadd.f32 %v3752_v34, %v2233_v33  ;;  %v2219_v8 = vld [vmem:[#allocation2 + $0x40] sm:$0xff]  ;;  %v2224_v25 = vld [vmem:[#allocation2 + $0x68] sm:$0xff]  ;;  %v2225_v14 = vld [vmem:[#allocation2 + $0x70] sm:$0xff] }
 0x39c   : > { %v2254_v46 = vadd.f32 %v3752_v34, %v2234_v39  ;;  %v2256_v12 = vadd.f32 %v3752_v34, %v2236_v4  ;;  %v2257_v44 = vadd.f32 %v3752_v34, %v2237_v7  ;;  %v2223_v43 = vld [vmem:[#allocation2 + $0x60] sm:$0xff]  ;;  %v2258_v10 = vadd.f32 %v3752_v34, %v2238_v57 }
 0x39d   : > { %v2255_v40 = vadd.f32 %v3752_v34, %v2235_v22  ;;  %v2267_v5 = vmax.f32 %v2251_v63, 0.0  ;;  %v2268_v37 = vmax.f32 %v2252_v1, 0.0  ;;  %v2221_v23 = vld [vmem:[#allocation2 + $0x50] sm:$0xff]  ;;  %v2269_v21 = vmax.f32 %v2253_v27, 0.0  ;;  %v2226_v62 = vld [vmem:[#allocation2 + $0x78] sm:$0xff] }
 0x39e   : > { %v2270_v55 = vmax.f32 %v2254_v46, 0.0  ;;  %v2272_v52 = vmax.f32 %v2256_v12, 0.0  ;;  %v2239_v54 = vmul.f32 %v2700_v18, %v2219_v8  ;;  %v2240_v29 = vmul.f32 %v2700_v18, %v2220_v31 }
 0x39f   : > { %2283 = vst.msk [vmem:[%s2971_s14] sm:$0xff] %vm957_vm8, %v2267_v5  ;;  %v2271_v48 = vmax.f32 %v2255_v40, 0.0  ;;  %v2273_v59 = vmax.f32 %v2257_v44, 0.0  ;;  %v2241_v20 = vmul.f32 %v2700_v18, %v2221_v23  ;;  %v2242_v51 = vmul.f32 %v2700_v18, %v2222_v2 }
 0x3a0   : > { %2284 = vst.msk [vmem:[%s2971_s14 + $0x8] sm:$0xff] %vm957_vm8, %v2268_v37  ;;  %v2243_v9 = vmul.f32 %v2700_v18, %v2223_v43  ;;  %v2259_v16 = vadd.f32 %v3752_v34, %v2239_v54  ;;  %v2260_v30 = vadd.f32 %v3752_v34, %v2240_v29  ;;  %v2244_v61 = vmul.f32 %v2700_v18, %v2224_v25 }
 0x3a1   : > { %2285 = vst.msk [vmem:[%s2971_s14 + $0x10] sm:$0xff] %vm957_vm8, %v2269_v21  ;;  %v2245_v38 = vmul.f32 %v2700_v18, %v2225_v14  ;;  %v2274_v24 = vmax.f32 %v2258_v10, 0.0  ;;  %v2261_v3 = vadd.f32 %v3752_v34, %v2241_v20  ;;  %v2262_v58 = vadd.f32 %v3752_v34, %v2242_v51 }
 0x3a2   : > { %2286 = vst.msk [vmem:[%s2971_s14 + $0x18] sm:$0xff] %vm957_vm8, %v2270_v55  ;;  %v2246_v6 = vmul.f32 %v2700_v18, %v2226_v62  ;;  %v2275_v45 = vmax.f32 %v2259_v16, 0.0  ;;  %v2263_v26 = vadd.f32 %v3752_v34, %v2243_v9  ;;  %v2276_v42 = vmax.f32 %v2260_v30, 0.0 }
 0x3a3   : > { %2287 = vst.msk [vmem:[%s2971_s14 + $0x20] sm:$0xff] %vm957_vm8, %v2271_v48  ;;  %v2264_v60 = vadd.f32 %v3752_v34, %v2244_v61  ;;  %v2277_v47 = vmax.f32 %v2261_v3, 0.0  ;;  %v2265_v35 = vadd.f32 %v3752_v34, %v2245_v38  ;;  %v2278_v36 = vmax.f32 %v2262_v58, 0.0 }
 0x3a4   : > { %2288 = vst.msk [vmem:[%s2971_s14 + $0x28] sm:$0xff] %vm957_vm8, %v2272_v52  ;;  %v2266_v0 = vadd.f32 %v3752_v34, %v2246_v6  ;;  %v2279_v41 = vmax.f32 %v2263_v26, 0.0 }
 0x3a5   : > { %2289 = vst.msk [vmem:[%s2971_s14 + $0x30] sm:$0xff] %vm957_vm8, %v2273_v59  ;;  %v2280_v50 = vmax.f32 %v2264_v60, 0.0  ;;  %v2281_v15 = vmax.f32 %v2265_v35, 0.0 }
 0x3a6   : > { %2290 = vst.msk [vmem:[%s2971_s14 + $0x38] sm:$0xff] %vm957_vm8, %v2274_v24  ;;  %v2282_v18 = vmax.f32 %v2266_v0, 0.0 }
 0x3a7   : > { %2291 = vst.msk [vmem:[%s2971_s14 + $0x40] sm:$0xff] %vm957_vm8, %v2275_v45 }
 0x3a8   : > { %2292 = vst.msk [vmem:[%s2971_s14 + $0x48] sm:$0xff] %vm957_vm8, %v2276_v42 }
 0x3a9   : > { %2293 = vst.msk [vmem:[%s2971_s14 + $0x50] sm:$0xff] %vm957_vm8, %v2277_v47 }
 0x3aa   : > { %2294 = vst.msk [vmem:[%s2971_s14 + $0x58] sm:$0xff] %vm957_vm8, %v2278_v36 }
 0x3ab   : > { %2295 = vst.msk [vmem:[%s2971_s14 + $0x60] sm:$0xff] %vm957_vm8, %v2279_v41 }
 0x3ac   : > { %2296 = vst.msk [vmem:[%s2971_s14 + $0x68] sm:$0xff] %vm957_vm8, %v2280_v50 }
 0x3ad   : > { %2297 = vst.msk [vmem:[%s2971_s14 + $0x70] sm:$0xff] %vm957_vm8, %v2281_v15 }
 0x3ae   : > { %2298 = vst.msk [vmem:[%s2971_s14 + $0x78] sm:$0xff] %vm957_vm8, %v2282_v18 }
 0x3af PF: > { %s16_s25 = sadd.s32 1, %s2740_s25   ;;  %s3899_s21 = smov %s2732_s23 }
 0x3b0   : > { %p13_p13 = scmp.ge.s32.totalorder %s16_s25, 6   ;;  %s3900_s22 = smov %s2736_s24 }
 0x3b1   : > { %s3901_s23 = smov %s3904_s26  ;;  %s3902_s24 = smov %s3908_s27 }
 0x3b2   :  { %15 = sbr.rel (!%p13_p13) target bundleno = 3 (0x3), region = 96 }

</bundles_post_ra>
